<compile_context>
chip_gen: v7x
topology: tpu7x:2x2x1
jax: 0.10.0
libtpu: 0.0.40
codegen_flags: <defaults>
</compile_context>

<pallas_src>
import functools
import math

import jax
import jax.numpy as jnp
from jax.experimental import pallas as pl
from jax.experimental.pallas import tpu as pltpu

_LANE = 128        # last dims padded to multiples of this
_DEF_TILE_M = 512  # row-tile target (memory-bound passes ~85% of HBM roofline here)
_DEF_TILE_K = 1024 # contraction-tile target for the N-wide adj @ s matmul
_DEF_TILE_N = 512  # output-column-tile target for the gram kernel


def _round_up(x, m):
    return (x + m - 1) // m * m


def _pick_tile(dim, target):
    """Largest multiple of 128 that divides `dim` (itself a multiple of 128), <= target."""
    t = max(_LANE, min(target, dim) // _LANE * _LANE)
    while dim % t:
        t -= _LANE
    return t


def _pad2d(a, rows, cols):
    pr, pc = rows - a.shape[0], cols - a.shape[1]
    if pr == 0 and pc == 0:
        return a
    return jnp.pad(a, ((0, pr), (0, pc)))


# ---------------------------------------------------------------------------
# Kernel 1: generic row- and K-tiled matmul with optional bias / relu / fused
#           "relu(left half) + relu(right half)" epilogue.
# ---------------------------------------------------------------------------
def _epilogue(acc, bias_ref, apply_relu, combine_halves):
    if bias_ref is not None:
        acc = acc + bias_ref[...]
    if combine_halves:
        half = acc.shape[1] // 2
        return jnp.maximum(acc[:, :half], 0.0) + jnp.maximum(acc[:, half:], 0.0)
    if apply_relu:
        return jnp.maximum(acc, 0.0)
    return acc


def _matmul_kernel(*refs, apply_bias, apply_relu, combine_halves, n_k):
    if apply_bias:
        a_ref, b_ref, bias_ref, *rest = refs
    else:
        a_ref, b_ref, *rest = refs
        bias_ref = None

    if n_k == 1:
        (o_ref,) = rest
        acc = jnp.dot(a_ref[...], b_ref[...], preferred_element_type=jnp.float32)
        o_ref[...] = _epilogue(acc, bias_ref, apply_relu, combine_halves).astype(o_ref.dtype)
    else:
        o_ref, acc_ref = rest

        @pl.when(pl.program_id(1) == 0)
        def _init():
            acc_ref[...] = jnp.zeros_like(acc_ref)

        acc_ref[...] += jnp.dot(a_ref[...], b_ref[...],
                                preferred_element_type=jnp.float32)

        @pl.when(pl.program_id(1) == n_k - 1)
        def _finalize():
            o_ref[...] = _epilogue(acc_ref[...], bias_ref, apply_relu,
                                   combine_halves).astype(o_ref.dtype)


def _matmul(a, b, bias=None, *, apply_relu=False, combine_halves=False, out_dtype,
            tile_m=_DEF_TILE_M, tile_k=_DEF_TILE_K):
    m, k = a.shape
    kb, n = b.shape
    assert k == kb
    tm = _pick_tile(m, tile_m)
    tk = _pick_tile(k, tile_k)
    n_k = k // tk
    n_out = n // 2 if combine_halves else n
    apply_bias = bias is not None

    inputs = [a, b]
    in_specs = [pl.BlockSpec((tm, tk), lambda i, kk: (i, kk)),
                pl.BlockSpec((tk, n), lambda i, kk: (kk, 0))]
    if apply_bias:
        inputs.append(bias)
        in_specs.append(pl.BlockSpec((1, n), lambda i, kk: (0, 0)))

    scratch = [] if n_k == 1 else [pltpu.VMEM((tm, n), jnp.float32)]
    kernel = functools.partial(_matmul_kernel, apply_bias=apply_bias,
                               apply_relu=apply_relu,
                               combine_halves=combine_halves, n_k=n_k)
    bytes_accessed = int(a.size * a.dtype.itemsize + b.size * b.dtype.itemsize
                         + (bias.size * bias.dtype.itemsize if apply_bias else 0)
                         + m * n_out * jnp.dtype(out_dtype).itemsize)
    return pl.pallas_call(
        kernel,
        out_shape=jax.ShapeDtypeStruct((m, n_out), out_dtype),
        grid=(m // tm, n_k),
        in_specs=in_specs,
        out_specs=pl.BlockSpec((tm, n_out), lambda i, kk: (i, 0)),
        scratch_shapes=scratch,
        compiler_params=pltpu.CompilerParams(
            dimension_semantics=("parallel", "arbitrary")),
        cost_estimate=pl.CostEstimate(flops=int(2 * m * k * n), transcendentals=0,
                                      bytes_accessed=bytes_accessed),
    )(*inputs)


# ---------------------------------------------------------------------------
# Kernel 2: Graphite "gather" reduction   t = A^T @ [h_0 | h_1 | ...],
#           h_j = x_j @ W_j + b_j.  Row axis is a reduction (resident accumulator,
#           pl.when init); a leading "parallel" split axis gives two partial
#           accumulators so v7x's two TensorCores share the reduction.
# ---------------------------------------------------------------------------
def _graphite_t_kernel(*refs, n_inputs):
    a_ref = refs[3 * n_inputs]
    t_ref = refs[3 * n_inputs + 1]

    @pl.when(pl.program_id(1) == 0)
    def _init():
        t_ref[...] = jnp.zeros_like(t_ref)

    hs = []
    for j in range(n_inputs):
        x_ref, w_ref, b_ref = refs[3 * j], refs[3 * j + 1], refs[3 * j + 2]
        hs.append(jnp.dot(x_ref[...], w_ref[...],
                          preferred_element_type=jnp.float32) + b_ref[...])
    h = hs[0] if n_inputs == 1 else jnp.concatenate(hs, axis=1)
    h = h.astype(a_ref.dtype)
    # A_tile^T @ h without a materialised transpose: contract axis 0 of both
    # operands so the transposed operand rides the MXU feed path.
    t_ref[...] += jax.lax.dot_general(
        a_ref[...], h, dimension_numbers=(((0,), (0,)), ((), ())),
        preferred_element_type=jnp.float32)


def _graphite_t(xs, ws, bs, a, *, tile_m=_DEF_TILE_M, n_split=2):
    m, k = a.shape
    d_tot = sum(int(w.shape[1]) for w in ws)
    tm = _pick_tile(m, tile_m)
    m_tiles = m // tm
    if m_tiles < n_split or m_tiles % n_split != 0:
        n_split = 1
    tiles_per_split = m_tiles // n_split

    inputs, in_specs = [], []
    flops = 0
    for x, w, b in zip(xs, ws, bs):
        f, d = int(x.shape[1]), int(w.shape[1])
        inputs += [x, w, b]
        in_specs += [
            pl.BlockSpec((tm, f), lambda s, i: (s * tiles_per_split + i, 0)),
            pl.BlockSpec((f, d), lambda s, i: (0, 0)),
            pl.BlockSpec((1, d), lambda s, i: (0, 0)),
        ]
        flops += 2 * m * f * d
    inputs.append(a)
    in_specs.append(pl.BlockSpec((tm, k), lambda s, i: (s * tiles_per_split + i, 0)))
    flops += 2 * m * k * d_tot

    bytes_accessed = int(sum(v.size * v.dtype.itemsize for v in inputs)
                         + n_split * k * d_tot * 4)
    out = pl.pallas_call(
        functools.partial(_graphite_t_kernel, n_inputs=len(xs)),
        out_shape=jax.ShapeDtypeStruct((n_split * k, d_tot), jnp.float32),
        grid=(n_split, tiles_per_split),
        in_specs=in_specs,
        out_specs=pl.BlockSpec((k, d_tot), lambda s, i: (s, 0)),
        compiler_params=pltpu.CompilerParams(
            dimension_semantics=("parallel", "arbitrary")),
        cost_estimate=pl.CostEstimate(flops=int(flops), transcendentals=0,
                                      bytes_accessed=bytes_accessed),
    )(*inputs)
    if n_split > 1:
        out = out.reshape(n_split, k, d_tot).sum(axis=0)
    return out  # (k, d_tot) float32


# ---------------------------------------------------------------------------
# Kernel 3: Gram matrix  U @ U^T  with a 2-D output grid; the column operand is
#           contracted over its feature axis (no transposed copy of U in HBM).
# ---------------------------------------------------------------------------
def _gram_kernel(ur_ref, uc_ref, o_ref):
    o_ref[...] = jax.lax.dot_general(
        ur_ref[...], uc_ref[...], dimension_numbers=(((1,), (1,)), ((), ())),
        preferred_element_type=jnp.float32).astype(o_ref.dtype)


def _gram(u, *, out_dtype, tile_m=_DEF_TILE_M, tile_n=_DEF_TILE_N):
    n, e = u.shape
    tm = _pick_tile(n, tile_m)
    tn = _pick_tile(n, tile_n)
    bytes_accessed = int(2 * u.size * u.dtype.itemsize
                         + n * n * jnp.dtype(out_dtype).itemsize)
    # TODO(synk): U @ U^T is symmetric -- skipping upper-triangle tiles and mirroring
    # would halve MXU work and HBM stores on the dominant N^2 term.
    return pl.pallas_call(
        _gram_kernel,
        out_shape=jax.ShapeDtypeStruct((n, n), out_dtype),
        grid=(n // tm, n // tn),
        in_specs=[pl.BlockSpec((tm, e), lambda i, j: (i, 0)),
                  pl.BlockSpec((tn, e), lambda i, j: (j, 0))],
        out_specs=pl.BlockSpec((tm, tn), lambda i, j: (i, j)),
        compiler_params=pltpu.CompilerParams(
            dimension_semantics=("parallel", "parallel")),
        cost_estimate=pl.CostEstimate(flops=int(2 * n * n * e), transcendentals=0,
                                      bytes_accessed=bytes_accessed),
    )(u, u)


# ---------------------------------------------------------------------------
# Layer wrappers (pad -> pallas -> slice back to true shapes)
# ---------------------------------------------------------------------------
def gcn_layer(x, adj_p, w, b, *, apply_relu, compute_dtype, n_true):
    """GraphConvolution: act(adj @ (x @ W) + b).  adj_p is pre-padded / pre-cast."""
    n_p = adj_p.shape[0]
    f_in, d_out = w.shape
    f_p = _round_up(f_in, _LANE)
    d_p = _round_up(d_out, _LANE)
    x_p = _pad2d(x, n_p, f_p).astype(compute_dtype)
    w_p = _pad2d(w, f_p, d_p).astype(compute_dtype)
    b_p = _pad2d(b.reshape(1, -1).astype(jnp.float32), 1, d_p)  # added on f32 acc
    s = _matmul(x_p, w_p, out_dtype=compute_dtype)               # x @ W (no bias)
    out = _matmul(adj_p, s, bias=b_p, apply_relu=apply_relu,     # K-tiled over N
                  out_dtype=compute_dtype)
    return out[:n_true, :d_out]


def graphite_layer(x, w, b, a_p, *, apply_relu, compute_dtype, n_true):
    """GraphiteLayer: act(A (A^T h)), h = x @ W + b, with A = [A1 | A2] pre-built."""
    n_p = a_p.shape[0]
    f_in, d_out = w.shape
    f_p = _round_up(f_in, _LANE)
    d_p = _round_up(d_out, _LANE)
    x_p = _pad2d(x, n_p, f_p).astype(compute_dtype)
    w_p = _pad2d(w, f_p, d_p).astype(compute_dtype)
    b_p = _pad2d(b.reshape(1, -1).astype(jnp.float32), 1, d_p)
    t = _graphite_t([x_p], [w_p], [b_p], a_p)                    # (k_p, d_p) f32
    out = _matmul(a_p, t.astype(compute_dtype), apply_relu=apply_relu,
                  out_dtype=compute_dtype)
    return out[:n_true, :d_out]


def fused_graphite_decode01(x1, w1, b1, x0, w0, b0, a_p, *, compute_dtype, n_true):
    """relu(A (A^T h1)) + relu(A (A^T h0)) with h_i = x_i @ W_i + b_i, fused.

    One A^T reduction produces t = [t1 | t0] (256-wide MXU output) and one A @ t pass
    does the per-half relu + add in its epilogue, so A is streamed from HBM once.
    """
    assert w1.shape[1] == w0.shape[1]
    n_p = a_p.shape[0]
    d_out = w1.shape[1]
    d_p = _round_up(d_out, _LANE)

    def prep(x, w, b):
        f_p = _round_up(x.shape[1], _LANE)
        return (_pad2d(x, n_p, f_p).astype(compute_dtype),
                _pad2d(w, f_p, d_p).astype(compute_dtype),
                _pad2d(b.reshape(1, -1).astype(jnp.float32), 1, d_p))

    x1_p, w1_p, b1_p = prep(x1, w1, b1)
    x0_p, w0_p, b0_p = prep(x0, w0, b0)
    t = _graphite_t([x1_p, x0_p], [w1_p, w0_p], [b1_p, b0_p], a_p)  # (k_p, 2*d_p)
    out = _matmul(a_p, t.astype(compute_dtype), combine_halves=True,
                  out_dtype=compute_dtype)
    return out[:n_true, :d_out]


# ---------------------------------------------------------------------------
# Full GraphiteAE forward
# ---------------------------------------------------------------------------
def graphite_ae_forward(adj, x, params, *, compute_dtype=jnp.bfloat16,
                        autoregressive_scalar=0.5):
    n = x.shape[0]
    n_p = _round_up(n, _LANE)
    adj_p = _pad2d(adj, n_p, n_p).astype(compute_dtype)   # padded + cast once

    support = gcn_layer(x, adj_p, params["hidden_w"], params["hidden_b"],
                        apply_relu=True, compute_dtype=compute_dtype, n_true=n)
    support = gcn_layer(support, adj_p, params["zmean_w"], params["zmean_b"],
                        apply_relu=True, compute_dtype=compute_dtype, n_true=n)

    # Row-normalisation / degree-scaling glue: cheap elementwise + (N,E)x(E,1)
    # matvecs, kept in plain XLA (f32).
    # TODO(synk): fuse into a Pallas epilogue if it ever shows up in a profile.
    support_f32 = support.astype(jnp.float32)
    norm = jnp.sqrt(jnp.sum(support_f32 * support_f32, axis=1, keepdims=True))
    recon_1 = support_f32 / jnp.maximum(norm, 1e-12)       # F.normalize(p=2, dim=1)
    recon_2 = jnp.ones_like(recon_1)
    recon_2 = recon_2 / jnp.sqrt(jnp.sum(recon_2, axis=1, keepdims=True))
    d = recon_1 @ recon_1.sum(0)[:, None] + recon_2 @ recon_2.sum(0)[:, None]
    d = d ** -0.5
    recon_1 = recon_1 * d
    recon_2 = recon_2 * d

    # A = [A1 | A2] built, padded and cast ONCE; streamed by all three decode layers.
    # TODO(synk): recon_2 has identical rows (rank-1); its half of A could be replaced
    # by two matvecs + a rank-1 update for exact numerics at half the A-side work.
    a = jnp.concatenate([recon_1, recon_2], axis=1)
    a_p = _pad2d(a, n_p, _round_up(a.shape[1], _LANE)).astype(compute_dtype)

    update = fused_graphite_decode01(support, params["dec1_w"], params["dec1_b"],
                                     x, params["dec0_w"], params["dec0_b"], a_p,
                                     compute_dtype=compute_dtype, n_true=n)
    update = graphite_layer(update, params["dec2_w"], params["dec2_b"], a_p,
                            apply_relu=False, compute_dtype=compute_dtype, n_true=n)
    update = ((1.0 - autoregressive_scalar) * support_f32
              + autoregressive_scalar * update.astype(jnp.float32))

    e_p = _round_up(update.shape[1], _LANE)
    u_p = _pad2d(update, n_p, e_p).astype(compute_dtype)
    # TODO(synk): for tiny graphs (everything fits in VMEM) a single fused pallas_call
    # doing all matmuls + glue would remove the remaining per-call dispatch overhead.
    recon = _gram(u_p, out_dtype=jnp.float32)
    return recon[:n, :n]


# ---------------------------------------------------------------------------
# Pure-JAX reference (mirrors the PyTorch module in f32)
# ---------------------------------------------------------------------------
def reference_forward(adj, x, params, autoregressive_scalar=0.5):
    relu = lambda v: jnp.maximum(v, 0.0)

    def gcn(inp, w, b, act):
        return act(adj @ (inp @ w) + b)

    def graphite(inp, w, b, i1, i2, act):
        h = inp @ w + b
        return act(i1 @ (i1.T @ h) + i2 @ (i2.T @ h))

    support = gcn(x, params["hidden_w"], params["hidden_b"], relu)
    support = gcn(support, params["zmean_w"], params["zmean_b"], relu)
    norm = jnp.sqrt(jnp.sum(support * support, axis=1, keepdims=True))
    recon_1 = support / jnp.maximum(norm, 1e-12)
    recon_2 = jnp.ones_like(recon_1)
    recon_2 = recon_2 / jnp.sqrt(jnp.sum(recon_2, axis=1, keepdims=True))
    d = recon_1 @ recon_1.sum(0)[:, None] + recon_2 @ recon_2.sum(0)[:, None]
    d = d ** -0.5
    recon_1 = recon_1 * d
    recon_2 = recon_2 * d
    update = (graphite(support, params["dec1_w"], params["dec1_b"], recon_1, recon_2, relu)
              + graphite(x, params["dec0_w"], params["dec0_b"], recon_1, recon_2, relu))
    update = graphite(update, params["dec2_w"], params["dec2_b"], recon_1, recon_2,
                      lambda v: v)
    update = (1.0 - autoregressive_scalar) * support + autoregressive_scalar * update
    return update @ update.T


if __name__ == "__main__":
    # Small shapes consistent with the module.
    n_nodes, num_features, hidden_dim, embed_dim, decode_dim = 8, 32, 32, 16, 32

    key = jax.random.PRNGKey(0)
    keys = jax.random.split(key, 12)

    def uniform_param(k, shape, fan_out):
        # Mirrors reset_parameters(): stdv = 1/sqrt(out_features), U(-stdv, stdv).
        stdv = 1.0 / math.sqrt(fan_out)
        return jax.random.uniform(k, shape, jnp.float32, -stdv, stdv)

    params = {
        "hidden_w": uniform_param(keys[0], (num_features, hidden_dim), hidden_dim),
        "hidden_b": uniform_param(keys[1], (hidden_dim,), hidden_dim),
        "zmean_w": uniform_param(keys[2], (hidden_dim, embed_dim), embed_dim),
        "zmean_b": uniform_param(keys[3], (embed_dim,), embed_dim),
        "dec0_w": uniform_param(keys[4], (num_features, decode_dim), decode_dim),
        "dec0_b": uniform_param(keys[5], (decode_dim,), decode_dim),
        "dec1_w": uniform_param(keys[6], (embed_dim, decode_dim), decode_dim),
        "dec1_b": uniform_param(keys[7], (decode_dim,), decode_dim),
        "dec2_w": uniform_param(keys[8], (decode_dim, embed_dim), embed_dim),
        "dec2_b": uniform_param(keys[9], (embed_dim,), embed_dim),
    }

    x = jax.random.normal(keys[10], (n_nodes, num_features), jnp.float32)
    adj = jax.random.uniform(keys[11], (n_nodes, n_nodes), jnp.float32) / n_nodes

    fwd_f32 = jax.jit(functools.partial(graphite_ae_forward, compute_dtype=jnp.float32))
    fwd_bf16 = jax.jit(functools.partial(graphite_ae_forward, compute_dtype=jnp.bfloat16))

    out_f32 = jax.block_until_ready(fwd_f32(adj, x, params))
    out_bf16 = jax.block_until_ready(fwd_bf16(adj, x, params))
    ref = reference_forward(adj, x, params)

    assert out_f32.shape == (n_nodes, n_nodes)
    assert out_bf16.shape == (n_nodes, n_nodes)

    scale = float(jnp.max(jnp.abs(ref))) + 1.0
    err_f32 = float(jnp.max(jnp.abs(out_f32 - ref)))
    err_bf16 = float(jnp.max(jnp.abs(out_bf16 - ref)))
    assert err_f32 <= 5e-3 * scale, f"f32 mismatch: {err_f32} (scale {scale})"
    assert err_bf16 <= 8e-2 * scale, f"bf16 mismatch: {err_bf16} (scale {scale})"

    print("KERNEL_OK")
</pallas_src>

<mosaic_0001>
module attributes {stable_mosaic.version = 11 : i64} {
  func.func @_matmul_kernel(%arg0: i32, %arg1: i32, %arg2: memref<128x128xf32, #tpu.memory_space<vmem>>, %arg3: memref<128x128xf32, #tpu.memory_space<vmem>>, %arg4: memref<128x128xf32, #tpu.memory_space<vmem>>) attributes {dimension_semantics = [#tpu.dimension_semantics<parallel>, #tpu.dimension_semantics<arbitrary>], iteration_bounds = array<i64: 1, 1>, scalar_prefetch = 0 : i64, scratch_operands = 0 : i64, tpu.core_type = #tpu.core_type<tc>, window_params = [{transform_indices = @transform_0, window_bounds = array<i64: 128, 128>}, {transform_indices = @transform_1, window_bounds = array<i64: 128, 128>}, {transform_indices = @transform_2, window_bounds = array<i64: 128, 128>}]} {
    %c0 = arith.constant 0 : index
    %c0_0 = arith.constant 0 : index
    %0 = vector.load %arg2[%c0, %c0_0] : memref<128x128xf32, #tpu.memory_space<vmem>>, vector<128x128xf32>
    %c0_1 = arith.constant 0 : index
    %c0_2 = arith.constant 0 : index
    %1 = vector.load %arg3[%c0_1, %c0_2] : memref<128x128xf32, #tpu.memory_space<vmem>>, vector<128x128xf32>
    %cst = arith.constant dense<0.000000e+00> : vector<128x128xf32>
    %2 = tpu.matmul %0, %1, %cst {dimension_numbers = #tpu.dot_dimension_numbers<[1], [0], [0], [1], [0, 0, 1, 1], [], []>} : vector<128x128xf32>, vector<128x128xf32>, vector<128x128xf32> -> vector<128x128xf32>
    %c0_3 = arith.constant 0 : index
    %c0_4 = arith.constant 0 : index
    %3 = vector.load %arg4[%c0_3, %c0_4] : memref<128x128xf32, #tpu.memory_space<vmem>>, vector<128x128xf32>
    tpu.vector_store %arg4[%c0_3, %c0_4], %2 {strides = array<i32>} : memref<128x128xf32, #tpu.memory_space<vmem>>, vector<128x128xf32>,
    return
  }
  func.func @transform_0(%arg0: i32, %arg1: i32) -> (i32, i32) {
    %c0_i32 = arith.constant 0 : i32
    return %arg0, %arg1 : i32, i32
  }
  func.func @transform_1(%arg0: i32, %arg1: i32) -> (i32, i32) {
    %c0_i32 = arith.constant 0 : i32
    %c0_i32_0 = arith.constant 0 : i32
    return %arg1, %c0_i32 : i32, i32
  }
  func.func @transform_2(%arg0: i32, %arg1: i32) -> (i32, i32) {
    %c0_i32 = arith.constant 0 : i32
    %c0_i32_0 = arith.constant 0 : i32
    return %arg0, %c0_i32 : i32, i32
  }
}

module attributes {stable_mosaic.version = 11 : i64} {
  func.func @_matmul_kernel(%arg0: i32, %arg1: i32, %arg2: memref<128x128xf32, #tpu.memory_space<vmem>>, %arg3: memref<128x128xf32, #tpu.memory_space<vmem>>, %arg4: memref<1x128xf32, #tpu.memory_space<vmem>>, %arg5: memref<128x128xf32, #tpu.memory_space<vmem>>) attributes {dimension_semantics = [#tpu.dimension_semantics<parallel>, #tpu.dimension_semantics<arbitrary>], iteration_bounds = array<i64: 1, 1>, scalar_prefetch = 0 : i64, scratch_operands = 0 : i64, tpu.core_type = #tpu.core_type<tc>, window_params = [{transform_indices = @transform_0, window_bounds = array<i64: 128, 128>}, {transform_indices = @transform_1, window_bounds = array<i64: 128, 128>}, {pipeline_mode = #tpu.pipeline_mode<synchronous>, transform_indices = @transform_2, window_bounds = array<i64: 1, 128>}, {transform_indices = @transform_3, window_bounds = array<i64: 128, 128>}]} {
    %c0 = arith.constant 0 : index
    %c0_0 = arith.constant 0 : index
    %0 = vector.load %arg2[%c0, %c0_0] : memref<128x128xf32, #tpu.memory_space<vmem>>, vector<128x128xf32>
    %c0_1 = arith.constant 0 : index
    %c0_2 = arith.constant 0 : index
    %1 = vector.load %arg3[%c0_1, %c0_2] : memref<128x128xf32, #tpu.memory_space<vmem>>, vector<128x128xf32>
    %cst = arith.constant dense<0.000000e+00> : vector<128x128xf32>
    %2 = tpu.matmul %0, %1, %cst {dimension_numbers = #tpu.dot_dimension_numbers<[1], [0], [0], [1], [0, 0, 1, 1], [], []>} : vector<128x128xf32>, vector<128x128xf32>, vector<128x128xf32> -> vector<128x128xf32>
    %c0_3 = arith.constant 0 : index
    %c0_4 = arith.constant 0 : index
    %3 = vector.load %arg4[%c0_3, %c0_4] : memref<1x128xf32, #tpu.memory_space<vmem>>, vector<1x128xf32>
    %4 = vector.broadcast %3 : vector<1x128xf32> to vector<128x128xf32>
    %5 = arith.addf %2, %4 : vector<128x128xf32>
    %cst_5 = arith.constant 0.000000e+00 : f32
    %6 = vector.broadcast %cst_5 : f32 to vector<128x128xf32>
    %7 = arith.maximumf %5, %6 : vector<128x128xf32>
    %c0_6 = arith.constant 0 : index
    %c0_7 = arith.constant 0 : index
    %8 = vector.load %arg5[%c0_6, %c0_7] : memref<128x128xf32, #tpu.memory_space<vmem>>, vector<128x128xf32>
    tpu.vector_store %arg5[%c0_6, %c0_7], %7 {strides = array<i32>} : memref<128x128xf32, #tpu.memory_space<vmem>>, vector<128x128xf32>,
    return
  }
  func.func @transform_0(%arg0: i32, %arg1: i32) -> (i32, i32) {
    %c0_i32 = arith.constant 0 : i32
    return %arg0, %arg1 : i32, i32
  }
  func.func @transform_1(%arg0: i32, %arg1: i32) -> (i32, i32) {
    %c0_i32 = arith.constant 0 : i32
    %c0_i32_0 = arith.constant 0 : i32
    return %arg1, %c0_i32 : i32, i32
  }
  func.func @transform_2(%arg0: i32, %arg1: i32) -> (i32, i32) {
    %c0_i32 = arith.constant 0 : i32
    %c0_i32_0 = arith.constant 0 : i32
    %c0_i32_1 = arith.constant 0 : i32
    return %c0_i32, %c0_i32_0 : i32, i32
  }
  func.func @transform_3(%arg0: i32, %arg1: i32) -> (i32, i32) {
    %c0_i32 = arith.constant 0 : i32
    %c0_i32_0 = arith.constant 0 : i32
    return %arg0, %c0_i32 : i32, i32
  }
}

module attributes {stable_mosaic.version = 11 : i64} {
  func.func @_graphite_t_kernel(%arg0: i32, %arg1: i32, %arg2: memref<128x128xf32, #tpu.memory_space<vmem>>, %arg3: memref<128x128xf32, #tpu.memory_space<vmem>>, %arg4: memref<1x128xf32, #tpu.memory_space<vmem>>, %arg5: memref<128x128xf32, #tpu.memory_space<vmem>>, %arg6: memref<128x128xf32, #tpu.memory_space<vmem>>, %arg7: memref<1x128xf32, #tpu.memory_space<vmem>>, %arg8: memref<128x128xf32, #tpu.memory_space<vmem>>, %arg9: memref<128x256xf32, #tpu.memory_space<vmem>>) attributes {dimension_semantics = [#tpu.dimension_semantics<parallel>, #tpu.dimension_semantics<arbitrary>], iteration_bounds = array<i64: 1, 1>, scalar_prefetch = 0 : i64, scratch_operands = 0 : i64, tpu.core_type = #tpu.core_type<tc>, window_params = [{transform_indices = @transform_0, window_bounds = array<i64: 128, 128>}, {pipeline_mode = #tpu.pipeline_mode<synchronous>, transform_indices = @transform_1, window_bounds = array<i64: 128, 128>}, {pipeline_mode = #tpu.pipeline_mode<synchronous>, transform_indices = @transform_2, window_bounds = array<i64: 1, 128>}, {transform_indices = @transform_3, window_bounds = array<i64: 128, 128>}, {pipeline_mode = #tpu.pipeline_mode<synchronous>, transform_indices = @transform_4, window_bounds = array<i64: 128, 128>}, {pipeline_mode = #tpu.pipeline_mode<synchronous>, transform_indices = @transform_5, window_bounds = array<i64: 1, 128>}, {transform_indices = @transform_6, window_bounds = array<i64: 128, 128>}, {transform_indices = @transform_7, window_bounds = array<i64: 128, 256>}]} {
    %c0_i32 = arith.constant 0 : i32
    %0 = arith.cmpi eq, %arg1, %c0_i32 : i32
    %1 = arith.extui %0 : i1 to i32
    %c0_i32_0 = arith.constant 0 : i32
    %2 = arith.cmpi ne, %1, %c0_i32_0 : i32
    scf.if %2 {
      %cst_20 = arith.constant 0.000000e+00 : f32
      %21 = vector.broadcast %cst_20 : f32 to vector<128x256xf32>
      %c0_21 = arith.constant 0 : index
      %c0_22 = arith.constant 0 : index
      %22 = vector.load %arg9[%c0_21, %c0_22] : memref<128x256xf32, #tpu.memory_space<vmem>>, vector<128x256xf32>
      tpu.vector_store %arg9[%c0_21, %c0_22], %21 {strides = array<i32>} : memref<128x256xf32, #tpu.memory_space<vmem>>, vector<128x256xf32>,
    } else {
    }
    %c0 = arith.constant 0 : index
    %c0_1 = arith.constant 0 : index
    %3 = vector.load %arg2[%c0, %c0_1] : memref<128x128xf32, #tpu.memory_space<vmem>>, vector<128x128xf32>
    %c0_2 = arith.constant 0 : index
    %c0_3 = arith.constant 0 : index
    %4 = vector.load %arg3[%c0_2, %c0_3] : memref<128x128xf32, #tpu.memory_space<vmem>>, vector<128x128xf32>
    %cst = arith.constant dense<0.000000e+00> : vector<128x128xf32>
    %5 = tpu.matmul %3, %4, %cst {dimension_numbers = #tpu.dot_dimension_numbers<[1], [0], [0], [1], [0, 0, 1, 1], [], []>} : vector<128x128xf32>, vector<128x128xf32>, vector<128x128xf32> -> vector<128x128xf32>
    %c0_4 = arith.constant 0 : index
    %c0_5 = arith.constant 0 : index
    %6 = vector.load %arg4[%c0_4, %c0_5] : memref<1x128xf32, #tpu.memory_space<vmem>>, vector<1x128xf32>
    %7 = vector.broadcast %6 : vector<1x128xf32> to vector<128x128xf32>
    %8 = arith.addf %5, %7 : vector<128x128xf32>
    %c0_6 = arith.constant 0 : index
    %c0_7 = arith.constant 0 : index
    %9 = vector.load %arg5[%c0_6, %c0_7] : memref<128x128xf32, #tpu.memory_space<vmem>>, vector<128x128xf32>
    %c0_8 = arith.constant 0 : index
    %c0_9 = arith.constant 0 : index
    %10 = vector.load %arg6[%c0_8, %c0_9] : memref<128x128xf32, #tpu.memory_space<vmem>>, vector<128x128xf32>
    %cst_10 = arith.constant dense<0.000000e+00> : vector<128x128xf32>
    %11 = tpu.matmul %9, %10, %cst_10 {dimension_numbers = #tpu.dot_dimension_numbers<[1], [0], [0], [1], [0, 0, 1, 1], [], []>} : vector<128x128xf32>, vector<128x128xf32>, vector<128x128xf32> -> vector<128x128xf32>
    %c0_11 = arith.constant 0 : index
    %c0_12 = arith.constant 0 : index
    %12 = vector.load %arg7[%c0_11, %c0_12] : memref<1x128xf32, #tpu.memory_space<vmem>>, vector<1x128xf32>
    %13 = vector.broadcast %12 : vector<1x128xf32> to vector<128x128xf32>
    %14 = arith.addf %11, %13 : vector<128x128xf32>
    %15 = tpu.concatenate %8, %14 in 1 : vector<128x128xf32>, vector<128x128xf32> -> vector<128x256xf32>
    %c0_13 = arith.constant 0 : index
    %c0_14 = arith.constant 0 : index
    %16 = vector.load %arg9[%c0_13, %c0_14] : memref<128x256xf32, #tpu.memory_space<vmem>>, vector<128x256xf32>
    %c0_15 = arith.constant 0 : index
    %c0_16 = arith.constant 0 : index
    %17 = vector.load %arg8[%c0_15, %c0_16] : memref<128x128xf32, #tpu.memory_space<vmem>>, vector<128x128xf32>
    %cst_17 = arith.constant dense<0.000000e+00> : vector<128x256xf32>
    %18 = tpu.matmul %17, %15, %cst_17 {dimension_numbers = #tpu.dot_dimension_numbers<[0], [0], [1], [1], [0, 1, 1, 1], [], []>} : vector<128x128xf32>, vector<128x256xf32>, vector<128x256xf32> -> vector<128x256xf32>
    %19 = arith.addf %16, %18 : vector<128x256xf32>
    %c0_18 = arith.constant 0 : index
    %c0_19 = arith.constant 0 : index
    %20 = vector.load %arg9[%c0_18, %c0_19] : memref<128x256xf32, #tpu.memory_space<vmem>>, vector<128x256xf32>
    tpu.vector_store %arg9[%c0_18, %c0_19], %19 {strides = array<i32>} : memref<128x256xf32, #tpu.memory_space<vmem>>, vector<128x256xf32>,
    return
  }
  func.func @transform_0(%arg0: i32, %arg1: i32) -> (i32, i32) {
    %c1_i32 = arith.constant 1 : i32
    %0 = arith.muli %arg0, %c1_i32 : i32
    %1 = arith.addi %0, %arg1 : i32
    %c0_i32 = arith.constant 0 : i32
    %c0_i32_0 = arith.constant 0 : i32
    return %1, %c0_i32 : i32, i32
  }
  func.func @transform_1(%arg0: i32, %arg1: i32) -> (i32, i32) {
    %c0_i32 = arith.constant 0 : i32
    %c0_i32_0 = arith.constant 0 : i32
    %c0_i32_1 = arith.constant 0 : i32
    return %c0_i32, %c0_i32_0 : i32, i32
  }
  func.func @transform_2(%arg0: i32, %arg1: i32) -> (i32, i32) {
    %c0_i32 = arith.constant 0 : i32
    %c0_i32_0 = arith.constant 0 : i32
    %c0_i32_1 = arith.constant 0 : i32
    return %c0_i32, %c0_i32_0 : i32, i32
  }
  func.func @transform_3(%arg0: i32, %arg1: i32) -> (i32, i32) {
    %c1_i32 = arith.constant 1 : i32
    %0 = arith.muli %arg0, %c1_i32 : i32
    %1 = arith.addi %0, %arg1 : i32
    %c0_i32 = arith.constant 0 : i32
    %c0_i32_0 = arith.constant 0 : i32
    return %1, %c0_i32 : i32, i32
  }
  func.func @transform_4(%arg0: i32, %arg1: i32) -> (i32, i32) {
    %c0_i32 = arith.constant 0 : i32
    %c0_i32_0 = arith.constant 0 : i32
    %c0_i32_1 = arith.constant 0 : i32
    return %c0_i32, %c0_i32_0 : i32, i32
  }
  func.func @transform_5(%arg0: i32, %arg1: i32) -> (i32, i32) {
    %c0_i32 = arith.constant 0 : i32
    %c0_i32_0 = arith.constant 0 : i32
    %c0_i32_1 = arith.constant 0 : i32
    return %c0_i32, %c0_i32_0 : i32, i32
  }
  func.func @transform_6(%arg0: i32, %arg1: i32) -> (i32, i32) {
    %c1_i32 = arith.constant 1 : i32
    %0 = arith.muli %arg0, %c1_i32 : i32
    %1 = arith.addi %0, %arg1 : i32
    %c0_i32 = arith.constant 0 : i32
    %c0_i32_0 = arith.constant 0 : i32
    return %1, %c0_i32 : i32, i32
  }
  func.func @transform_7(%arg0: i32, %arg1: i32) -> (i32, i32) {
    %c0_i32 = arith.constant 0 : i32
    %c0_i32_0 = arith.constant 0 : i32
    return %arg0, %c0_i32 : i32, i32
  }
}

module attributes {stable_mosaic.version = 11 : i64} {
  func.func @_matmul_kernel(%arg0: i32, %arg1: i32, %arg2: memref<128x128xf32, #tpu.memory_space<vmem>>, %arg3: memref<128x256xf32, #tpu.memory_space<vmem>>, %arg4: memref<128x128xf32, #tpu.memory_space<vmem>>) attributes {dimension_semantics = [#tpu.dimension_semantics<parallel>, #tpu.dimension_semantics<arbitrary>], iteration_bounds = array<i64: 1, 1>, scalar_prefetch = 0 : i64, scratch_operands = 0 : i64, tpu.core_type = #tpu.core_type<tc>, window_params = [{transform_indices = @transform_0, window_bounds = array<i64: 128, 128>}, {transform_indices = @transform_1, window_bounds = array<i64: 128, 256>}, {transform_indices = @transform_2, window_bounds = array<i64: 128, 128>}]} {
    %c0 = arith.constant 0 : index
    %c0_0 = arith.constant 0 : index
    %0 = vector.load %arg2[%c0, %c0_0] : memref<128x128xf32, #tpu.memory_space<vmem>>, vector<128x128xf32>
    %c0_1 = arith.constant 0 : index
    %c0_2 = arith.constant 0 : index
    %1 = vector.load %arg3[%c0_1, %c0_2] : memref<128x256xf32, #tpu.memory_space<vmem>>, vector<128x256xf32>
    %cst = arith.constant dense<0.000000e+00> : vector<128x256xf32>
    %2 = tpu.matmul %0, %1, %cst {dimension_numbers = #tpu.dot_dimension_numbers<[1], [0], [0], [1], [0, 0, 1, 1], [], []>} : vector<128x128xf32>, vector<128x256xf32>, vector<128x256xf32> -> vector<128x256xf32>
    %3 = vector.extract_strided_slice %2 {offsets = [0, 0], sizes = [128, 128], strides = [1, 1]} : vector<128x256xf32> to vector<128x128xf32>
    %cst_3 = arith.constant 0.000000e+00 : f32
    %4 = vector.broadcast %cst_3 : f32 to vector<128x128xf32>
    %5 = arith.maximumf %3, %4 : vector<128x128xf32>
    %6 = vector.extract_strided_slice %2 {offsets = [0, 128], sizes = [128, 128], strides = [1, 1]} : vector<128x256xf32> to vector<128x128xf32>
    %cst_4 = arith.constant 0.000000e+00 : f32
    %7 = vector.broadcast %cst_4 : f32 to vector<128x128xf32>
    %8 = arith.maximumf %6, %7 : vector<128x128xf32>
    %9 = arith.addf %5, %8 : vector<128x128xf32>
    %c0_5 = arith.constant 0 : index
    %c0_6 = arith.constant 0 : index
    %10 = vector.load %arg4[%c0_5, %c0_6] : memref<128x128xf32, #tpu.memory_space<vmem>>, vector<128x128xf32>
    tpu.vector_store %arg4[%c0_5, %c0_6], %9 {strides = array<i32>} : memref<128x128xf32, #tpu.memory_space<vmem>>, vector<128x128xf32>,
    return
  }
  func.func @transform_0(%arg0: i32, %arg1: i32) -> (i32, i32) {
    %c0_i32 = arith.constant 0 : i32
    return %arg0, %arg1 : i32, i32
  }
  func.func @transform_1(%arg0: i32, %arg1: i32) -> (i32, i32) {
    %c0_i32 = arith.constant 0 : i32
    %c0_i32_0 = arith.constant 0 : i32
    return %arg1, %c0_i32 : i32, i32
  }
  func.func @transform_2(%arg0: i32, %arg1: i32) -> (i32, i32) {
    %c0_i32 = arith.constant 0 : i32
    %c0_i32_0 = arith.constant 0 : i32
    return %arg0, %c0_i32 : i32, i32
  }
}

module attributes {stable_mosaic.version = 11 : i64} {
  func.func @_graphite_t_kernel(%arg0: i32, %arg1: i32, %arg2: memref<128x128xf32, #tpu.memory_space<vmem>>, %arg3: memref<128x128xf32, #tpu.memory_space<vmem>>, %arg4: memref<1x128xf32, #tpu.memory_space<vmem>>, %arg5: memref<128x128xf32, #tpu.memory_space<vmem>>, %arg6: memref<128x128xf32, #tpu.memory_space<vmem>>) attributes {dimension_semantics = [#tpu.dimension_semantics<parallel>, #tpu.dimension_semantics<arbitrary>], iteration_bounds = array<i64: 1, 1>, scalar_prefetch = 0 : i64, scratch_operands = 0 : i64, tpu.core_type = #tpu.core_type<tc>, window_params = [{transform_indices = @transform_0, window_bounds = array<i64: 128, 128>}, {pipeline_mode = #tpu.pipeline_mode<synchronous>, transform_indices = @transform_1, window_bounds = array<i64: 128, 128>}, {pipeline_mode = #tpu.pipeline_mode<synchronous>, transform_indices = @transform_2, window_bounds = array<i64: 1, 128>}, {transform_indices = @transform_3, window_bounds = array<i64: 128, 128>}, {transform_indices = @transform_4, window_bounds = array<i64: 128, 128>}]} {
    %c0_i32 = arith.constant 0 : i32
    %0 = arith.cmpi eq, %arg1, %c0_i32 : i32
    %1 = arith.extui %0 : i1 to i32
    %c0_i32_0 = arith.constant 0 : i32
    %2 = arith.cmpi ne, %1, %c0_i32_0 : i32
    scf.if %2 {
      %cst_13 = arith.constant 0.000000e+00 : f32
      %14 = vector.broadcast %cst_13 : f32 to vector<128x128xf32>
      %c0_14 = arith.constant 0 : index
      %c0_15 = arith.constant 0 : index
      %15 = vector.load %arg6[%c0_14, %c0_15] : memref<128x128xf32, #tpu.memory_space<vmem>>, vector<128x128xf32>
      tpu.vector_store %arg6[%c0_14, %c0_15], %14 {strides = array<i32>} : memref<128x128xf32, #tpu.memory_space<vmem>>, vector<128x128xf32>,
    } else {
    }
    %c0 = arith.constant 0 : index
    %c0_1 = arith.constant 0 : index
    %3 = vector.load %arg2[%c0, %c0_1] : memref<128x128xf32, #tpu.memory_space<vmem>>, vector<128x128xf32>
    %c0_2 = arith.constant 0 : index
    %c0_3 = arith.constant 0 : index
    %4 = vector.load %arg3[%c0_2, %c0_3] : memref<128x128xf32, #tpu.memory_space<vmem>>, vector<128x128xf32>
    %cst = arith.constant dense<0.000000e+00> : vector<128x128xf32>
    %5 = tpu.matmul %3, %4, %cst {dimension_numbers = #tpu.dot_dimension_numbers<[1], [0], [0], [1], [0, 0, 1, 1], [], []>} : vector<128x128xf32>, vector<128x128xf32>, vector<128x128xf32> -> vector<128x128xf32>
    %c0_4 = arith.constant 0 : index
    %c0_5 = arith.constant 0 : index
    %6 = vector.load %arg4[%c0_4, %c0_5] : memref<1x128xf32, #tpu.memory_space<vmem>>, vector<1x128xf32>
    %7 = vector.broadcast %6 : vector<1x128xf32> to vector<128x128xf32>
    %8 = arith.addf %5, %7 : vector<128x128xf32>
    %c0_6 = arith.constant 0 : index
    %c0_7 = arith.constant 0 : index
    %9 = vector.load %arg6[%c0_6, %c0_7] : memref<128x128xf32, #tpu.memory_space<vmem>>, vector<128x128xf32>
    %c0_8 = arith.constant 0 : index
    %c0_9 = arith.constant 0 : index
    %10 = vector.load %arg5[%c0_8, %c0_9] : memref<128x128xf32, #tpu.memory_space<vmem>>, vector<128x128xf32>
    %cst_10 = arith.constant dense<0.000000e+00> : vector<128x128xf32>
    %11 = tpu.matmul %10, %8, %cst_10 {dimension_numbers = #tpu.dot_dimension_numbers<[0], [0], [1], [1], [0, 1, 1, 1], [], []>} : vector<128x128xf32>, vector<128x128xf32>, vector<128x128xf32> -> vector<128x128xf32>
    %12 = arith.addf %9, %11 : vector<128x128xf32>
    %c0_11 = arith.constant 0 : index
    %c0_12 = arith.constant 0 : index
    %13 = vector.load %arg6[%c0_11, %c0_12] : memref<128x128xf32, #tpu.memory_space<vmem>>, vector<128x128xf32>
    tpu.vector_store %arg6[%c0_11, %c0_12], %12 {strides = array<i32>} : memref<128x128xf32, #tpu.memory_space<vmem>>, vector<128x128xf32>,
    return
  }
  func.func @transform_0(%arg0: i32, %arg1: i32) -> (i32, i32) {
    %c1_i32 = arith.constant 1 : i32
    %0 = arith.muli %arg0, %c1_i32 : i32
    %1 = arith.addi %0, %arg1 : i32
    %c0_i32 = arith.constant 0 : i32
    %c0_i32_0 = arith.constant 0 : i32
    return %1, %c0_i32 : i32, i32
  }
  func.func @transform_1(%arg0: i32, %arg1: i32) -> (i32, i32) {
    %c0_i32 = arith.constant 0 : i32
    %c0_i32_0 = arith.constant 0 : i32
    %c0_i32_1 = arith.constant 0 : i32
    return %c0_i32, %c0_i32_0 : i32, i32
  }
  func.func @transform_2(%arg0: i32, %arg1: i32) -> (i32, i32) {
    %c0_i32 = arith.constant 0 : i32
    %c0_i32_0 = arith.constant 0 : i32
    %c0_i32_1 = arith.constant 0 : i32
    return %c0_i32, %c0_i32_0 : i32, i32
  }
  func.func @transform_3(%arg0: i32, %arg1: i32) -> (i32, i32) {
    %c1_i32 = arith.constant 1 : i32
    %0 = arith.muli %arg0, %c1_i32 : i32
    %1 = arith.addi %0, %arg1 : i32
    %c0_i32 = arith.constant 0 : i32
    %c0_i32_0 = arith.constant 0 : i32
    return %1, %c0_i32 : i32, i32
  }
  func.func @transform_4(%arg0: i32, %arg1: i32) -> (i32, i32) {
    %c0_i32 = arith.constant 0 : i32
    %c0_i32_0 = arith.constant 0 : i32
    return %arg0, %c0_i32 : i32, i32
  }
}

module attributes {stable_mosaic.version = 11 : i64} {
  func.func @_gram_kernel(%arg0: i32, %arg1: i32, %arg2: memref<128x128xf32, #tpu.memory_space<vmem>>, %arg3: memref<128x128xf32, #tpu.memory_space<vmem>>, %arg4: memref<128x128xf32, #tpu.memory_space<vmem>>) attributes {dimension_semantics = [#tpu.dimension_semantics<parallel>, #tpu.dimension_semantics<parallel>], iteration_bounds = array<i64: 1, 1>, scalar_prefetch = 0 : i64, scratch_operands = 0 : i64, tpu.core_type = #tpu.core_type<tc>, window_params = [{transform_indices = @transform_0, window_bounds = array<i64: 128, 128>}, {transform_indices = @transform_1, window_bounds = array<i64: 128, 128>}, {transform_indices = @transform_2, window_bounds = array<i64: 128, 128>}]} {
    %c0 = arith.constant 0 : index
    %c0_0 = arith.constant 0 : index
    %0 = vector.load %arg2[%c0, %c0_0] : memref<128x128xf32, #tpu.memory_space<vmem>>, vector<128x128xf32>
    %c0_1 = arith.constant 0 : index
    %c0_2 = arith.constant 0 : index
    %1 = vector.load %arg3[%c0_1, %c0_2] : memref<128x128xf32, #tpu.memory_space<vmem>>, vector<128x128xf32>
    %cst = arith.constant dense<0.000000e+00> : vector<128x128xf32>
    %2 = tpu.matmul %0, %1, %cst {dimension_numbers = #tpu.dot_dimension_numbers<[1], [1], [0], [0], [0, 0, 1, 0], [], []>} : vector<128x128xf32>, vector<128x128xf32>, vector<128x128xf32> -> vector<128x128xf32>
    %c0_3 = arith.constant 0 : index
    %c0_4 = arith.constant 0 : index
    %3 = vector.load %arg4[%c0_3, %c0_4] : memref<128x128xf32, #tpu.memory_space<vmem>>, vector<128x128xf32>
    tpu.vector_store %arg4[%c0_3, %c0_4], %2 {strides = array<i32>} : memref<128x128xf32, #tpu.memory_space<vmem>>, vector<128x128xf32>,
    return
  }
  func.func @transform_0(%arg0: i32, %arg1: i32) -> (i32, i32) {
    %c0_i32 = arith.constant 0 : i32
    %c0_i32_0 = arith.constant 0 : i32
    return %arg0, %c0_i32 : i32, i32
  }
  func.func @transform_1(%arg0: i32, %arg1: i32) -> (i32, i32) {
    %c0_i32 = arith.constant 0 : i32
    %c0_i32_0 = arith.constant 0 : i32
    return %arg1, %c0_i32 : i32, i32
  }
  func.func @transform_2(%arg0: i32, %arg1: i32) -> (i32, i32) {
    %c0_i32 = arith.constant 0 : i32
    return %arg0, %arg1 : i32, i32
  }
}

</mosaic_0001>

<bundles_post_ra>
// kernel: graphite_ae_forward.9
= control target key start
LH: loop header
LB: loop body
LE: loop exit
PB: predicated region body
PF: predicated region fallthrough
CT: control target
= control target key end

     0   :  { %s503_s1 = inlined_call_operand.vmem [shape: f32[128,128], index: 1, kind: input, shape index: {}]   ;;  %s504_s0 = inlined_call_operand.vmem [shape: f32[128,128], index: 0, kind: input, shape index: {}]   ;;  %s505_s2 = inlined_call_operand.vmem [shape: f32[128,128], index: 2, kind: output, shape index: {}]  }
   0x1   :  { %v27_v0 = vld [vmem:[%s503_s1] sm:$0xff]  ;;  %v28_v1 = vld [vmem:[%s503_s1 + $0x8] sm:$0xff]  ;;  %v29_v2 = vld [vmem:[%s503_s1 + $0x10] sm:$0xff] }
   0x2   :  { %v296_v3 = vpack.c.bf16 %v28_v1, %v27_v0  ;;  %v30_v4 = vld [vmem:[%s503_s1 + $0x18] sm:$0xff]  ;;  %v31_v6 = vld [vmem:[%s503_s1 + $0x20] sm:$0xff]  ;;  %v32_v7 = vld [vmem:[%s503_s1 + $0x28] sm:$0xff] }
   0x3   :  { %v300_v5 = vpack.c.bf16 %v30_v4, %v29_v2  ;;  %v304_v8 = vpack.c.bf16 %v32_v7, %v31_v6  ;;  %v11_v9 = vld [vmem:[%s504_s0] sm:$0xff]  ;;  %v33_v11 = vld [vmem:[%s503_s1 + $0x30] sm:$0xff]  ;;  %v34_v12 = vld [vmem:[%s503_s1 + $0x38] sm:$0xff] }
   0x4   :  { %297 = vmatprep.subr.bf16.mxu0 %v296_v3  ;;  %328 = vmatprep.subr.bf16.mxu1 %v296_v3  ;;  %v19_v10 = vld [vmem:[%s504_s0 + $0x40] sm:$0xff]  ;;  %v308_v13 = vpack.c.bf16 %v34_v12, %v33_v11  ;;  %v36_v15 = vld [vmem:[%s503_s1 + $0x48] sm:$0xff]  ;;  %v37_v17 = vld [vmem:[%s503_s1 + $0x50] sm:$0xff] }
   0x5   :  { %299 = vmatpush3.bf16.msra.mxu0 %v296_v3  ;;  %336 = vmatpush3.bf16.msra.mxu1 %v296_v3  ;;  %v35_v14 = vld [vmem:[%s503_s1 + $0x40] sm:$0xff]  ;;  %v38_v18 = vld [vmem:[%s503_s1 + $0x58] sm:$0xff]  ;;  %v40_v21 = vld [vmem:[%s503_s1 + $0x68] sm:$0xff] }
   0x6   :  { %301 = vmatprep.subr.bf16.mxu0 %v300_v5  ;;  %329 = vmatprep.subr.bf16.mxu1 %v300_v5  ;;  %v312_v16 = vpack.c.bf16 %v36_v15, %v35_v14  ;;  %v316_v19 = vpack.c.bf16 %v38_v18, %v37_v17  ;;  %v39_v20 = vld [vmem:[%s503_s1 + $0x60] sm:$0xff]  ;;  %v41_v23 = vld [vmem:[%s503_s1 + $0x70] sm:$0xff]  ;;  %v42_v24 = vld [vmem:[%s503_s1 + $0x78] sm:$0xff] }
   0x7   :  { %272 = vmatprep.mubr.f32.mxu0 %v11_v9  ;;  %284 = vmatprep.mubr.f32.mxu1 %v19_v10  ;;  %v320_v22 = vpack.c.bf16 %v40_v21, %v39_v20  ;;  %v324_v25 = vpack.c.bf16 %v42_v24, %v41_v23  ;;  %v12_v26 = vld [vmem:[%s504_s0 + $0x8] sm:$0xff]  ;;  %v13_v28 = vld [vmem:[%s504_s0 + $0x10] sm:$0xff]  ;;  %v14_v30 = vld [vmem:[%s504_s0 + $0x18] sm:$0xff] }
   0x8   :  { %v20_v27 = vld [vmem:[%s504_s0 + $0x48] sm:$0xff]  ;;  %v21_v29 = vld [vmem:[%s504_s0 + $0x50] sm:$0xff]  ;;  %v22_v31 = vld [vmem:[%s504_s0 + $0x58] sm:$0xff] }
   0x9   :  { %303 = vmatpush3.bf16.msra.mxu0 %v300_v5  ;;  %337 = vmatpush3.bf16.msra.mxu1 %v300_v5  ;;  %v15_v32 = vld [vmem:[%s504_s0 + $0x20] sm:$0xff]  ;;  %v16_v34 = vld [vmem:[%s504_s0 + $0x28] sm:$0xff]  ;;  %v17_v36 = vld [vmem:[%s504_s0 + $0x30] sm:$0xff] }
   0xa   :  { %305 = vmatprep.subr.bf16.mxu0 %v304_v8  ;;  %330 = vmatprep.subr.bf16.mxu1 %v304_v8  ;;  %v23_v33 = vld [vmem:[%s504_s0 + $0x60] sm:$0xff]  ;;  %v24_v35 = vld [vmem:[%s504_s0 + $0x68] sm:$0xff]  ;;  %v25_v37 = vld [vmem:[%s504_s0 + $0x70] sm:$0xff] }
   0xb   :  { %v18_v38 = vld [vmem:[%s504_s0 + $0x38] sm:$0xff] }
   0xc   :  { %v26_v39 = vld [vmem:[%s504_s0 + $0x78] sm:$0xff] }
   0xd   :  { %307 = vmatpush3.bf16.msra.mxu0 %v304_v8  ;;  %338 = vmatpush3.bf16.msra.mxu1 %v304_v8 }
   0xe   :  { %309 = vmatprep.subr.bf16.mxu0 %v308_v13  ;;  %331 = vmatprep.subr.bf16.mxu1 %v308_v13 }
  0x11   :  { %311 = vmatpush3.bf16.msra.mxu0 %v308_v13  ;;  %339 = vmatpush3.bf16.msra.mxu1 %v308_v13 }
  0x12   :  { %313 = vmatprep.subr.bf16.mxu0 %v312_v16  ;;  %332 = vmatprep.subr.bf16.mxu1 %v312_v16 }
  0x15   :  { %315 = vmatpush3.bf16.msra.mxu0 %v312_v16  ;;  %340 = vmatpush3.bf16.msra.mxu1 %v312_v16 }
  0x16   :  { %317 = vmatprep.subr.bf16.mxu0 %v316_v19  ;;  %333 = vmatprep.subr.bf16.mxu1 %v316_v19 }
  0x19   :  { %319 = vmatpush3.bf16.msra.mxu0 %v316_v19  ;;  %341 = vmatpush3.bf16.msra.mxu1 %v316_v19 }
  0x1a   :  { %321 = vmatprep.subr.bf16.mxu0 %v320_v22  ;;  %334 = vmatprep.subr.bf16.mxu1 %v320_v22 }
  0x1d   :  { %323 = vmatpush3.bf16.msra.mxu0 %v320_v22  ;;  %342 = vmatpush3.bf16.msra.mxu1 %v320_v22 }
  0x1e   :  { %325 = vmatprep.subr.bf16.mxu0 %v324_v25  ;;  %335 = vmatprep.subr.bf16.mxu1 %v324_v25 }
  0x21   :  { %327 = vmatpush3.bf16.msra.mxu0 %v324_v25  ;;  %343 = vmatpush3.bf16.msra.mxu1 %v324_v25 }
  0x24   :  { %273 = vmatmul.mubr.f32.vlgmr.msra.gmra.mrb[0].mxu0 %v12_v26  ;;  %285 = vmatmul.mubr.f32.vlgmr.msra.gmra.mrb[0].mxu1 %v20_v27 }
  0x25   :  { %275 = vmatprep.mubr.f32.mxu0 %v13_v28  ;;  %287 = vmatprep.mubr.f32.mxu1 %v21_v29 }
  0x28   :  { %276 = vmatmul.mubr.f32.gmra.mrb[2].mxu0 %v14_v30  ;;  %288 = vmatmul.mubr.f32.gmra.mrb[2].mxu1 %v22_v31 }
  0x29   :  { %278 = vmatprep.mubr.f32.mxu0 %v15_v32  ;;  %290 = vmatprep.mubr.f32.mxu1 %v23_v33 }
  0x2c   :  { %279 = vmatmul.mubr.f32.gmra.mrb[4].mxu0 %v16_v34  ;;  %291 = vmatmul.mubr.f32.gmra.mrb[4].mxu1 %v24_v35 }
  0x2d   :  { %281 = vmatprep.mubr.f32.mxu0 %v17_v36  ;;  %293 = vmatprep.mubr.f32.mxu1 %v25_v37 }
  0x30   :  { %282 = vmatmul.mubr.f32.gmra.mrb[6].mxu0 %v18_v38  ;;  %294 = vmatmul.mubr.f32.gmra.mrb[6].mxu1 %v26_v39 }
  0xf7   :  { %v274_v40 = vpop.f32.mrb[0].mxu0  ;;  %v286_v41 = vpop.f32.mrb[0].mxu1 }
  0xf8   :  { %189 = vst [vmem:[%s505_s2 + $0x8] sm:$0xff] %v274_v40  ;;  %197 = vst [vmem:[%s505_s2 + $0x48] sm:$0xff] %v286_v41  ;;  %v109_v42 = vpop.f32.mrb[1].mxu0  ;;  %v149_v43 = vpop.f32.mrb[1].mxu1 }
  0xf9   :  { %188 = vst [vmem:[%s505_s2] sm:$0xff] %v109_v42  ;;  %196 = vst [vmem:[%s505_s2 + $0x40] sm:$0xff] %v149_v43 }
  0xfb   :  { %v277_v44 = vpop.f32.mrb[2].mxu0  ;;  %v289_v45 = vpop.f32.mrb[2].mxu1 }
  0xfc   :  { %191 = vst [vmem:[%s505_s2 + $0x18] sm:$0xff] %v277_v44  ;;  %199 = vst [vmem:[%s505_s2 + $0x58] sm:$0xff] %v289_v45  ;;  %v119_v46 = vpop.f32.mrb[3].mxu0  ;;  %v159_v47 = vpop.f32.mrb[3].mxu1 }
  0xfd   :  { %190 = vst [vmem:[%s505_s2 + $0x10] sm:$0xff] %v119_v46  ;;  %198 = vst [vmem:[%s505_s2 + $0x50] sm:$0xff] %v159_v47 }
  0xff   :  { %v280_v48 = vpop.f32.mrb[4].mxu0  ;;  %v292_v49 = vpop.f32.mrb[4].mxu1 }
 0x100   :  { %193 = vst [vmem:[%s505_s2 + $0x28] sm:$0xff] %v280_v48  ;;  %201 = vst [vmem:[%s505_s2 + $0x68] sm:$0xff] %v292_v49  ;;  %v129_v50 = vpop.f32.mrb[5].mxu0  ;;  %v169_v51 = vpop.f32.mrb[5].mxu1 }
 0x101   :  { %192 = vst [vmem:[%s505_s2 + $0x20] sm:$0xff] %v129_v50  ;;  %200 = vst [vmem:[%s505_s2 + $0x60] sm:$0xff] %v169_v51 }
 0x103   :  { %v283_v52 = vpop.f32.mrb[6].mxu0  ;;  %v295_v53 = vpop.f32.mrb[6].mxu1 }
 0x104   :  { %195 = vst [vmem:[%s505_s2 + $0x38] sm:$0xff] %v283_v52  ;;  %203 = vst [vmem:[%s505_s2 + $0x78] sm:$0xff] %v295_v53  ;;  %v139_v54 = vpop.f32.mrb[7].mxu0  ;;  %v179_v55 = vpop.f32.mrb[7].mxu1 }
 0x105   :  { %194 = vst [vmem:[%s505_s2 + $0x30] sm:$0xff] %v139_v54  ;;  %202 = vst [vmem:[%s505_s2 + $0x70] sm:$0xff] %v179_v55 }

// kernel: graphite_ae_forward.10
= control target key start
LH: loop header
LB: loop body
LE: loop exit
PB: predicated region body
PF: predicated region fallthrough
CT: control target
= control target key end

     0   :  { %s538_s1 = inlined_call_operand.vmem [shape: f32[128,128], index: 1, kind: input, shape index: {}]   ;;  %s539_s0 = inlined_call_operand.vmem [shape: f32[128,128], index: 0, kind: input, shape index: {}]   ;;  %s540_s2 = inlined_call_operand.vmem [shape: f32[1,128], index: 2, kind: input, shape index: {}]   ;;  %s541_s3 = inlined_call_operand.vmem [shape: f32[128,128], index: 3, kind: output, shape index: {}]  }
   0x1   :  { %v30_v0 = vld [vmem:[%s538_s1] sm:$0xff]  ;;  %v31_v1 = vld [vmem:[%s538_s1 + $0x8] sm:$0xff]  ;;  %v32_v2 = vld [vmem:[%s538_s1 + $0x10] sm:$0xff] }
   0x2   :  { %v323_v3 = vpack.c.bf16 %v31_v1, %v30_v0  ;;  %v33_v4 = vld [vmem:[%s538_s1 + $0x18] sm:$0xff]  ;;  %v34_v6 = vld [vmem:[%s538_s1 + $0x20] sm:$0xff]  ;;  %v35_v7 = vld [vmem:[%s538_s1 + $0x28] sm:$0xff] }
   0x3   :  { %v327_v5 = vpack.c.bf16 %v33_v4, %v32_v2  ;;  %v331_v8 = vpack.c.bf16 %v35_v7, %v34_v6  ;;  %v14_v9 = vld [vmem:[%s539_s0] sm:$0xff]  ;;  %v36_v11 = vld [vmem:[%s538_s1 + $0x30] sm:$0xff]  ;;  %v37_v12 = vld [vmem:[%s538_s1 + $0x38] sm:$0xff] }
   0x4   :  { %324 = vmatprep.subr.bf16.mxu0 %v323_v3  ;;  %355 = vmatprep.subr.bf16.mxu1 %v323_v3  ;;  %v22_v10 = vld [vmem:[%s539_s0 + $0x40] sm:$0xff]  ;;  %v335_v13 = vpack.c.bf16 %v37_v12, %v36_v11  ;;  %v39_v15 = vld [vmem:[%s538_s1 + $0x48] sm:$0xff]  ;;  %v40_v17 = vld [vmem:[%s538_s1 + $0x50] sm:$0xff] }
   0x5   :  { %326 = vmatpush3.bf16.msra.mxu0 %v323_v3  ;;  %363 = vmatpush3.bf16.msra.mxu1 %v323_v3  ;;  %v38_v14 = vld [vmem:[%s538_s1 + $0x40] sm:$0xff]  ;;  %v41_v18 = vld [vmem:[%s538_s1 + $0x58] sm:$0xff]  ;;  %v43_v21 = vld [vmem:[%s538_s1 + $0x68] sm:$0xff] }
   0x6   :  { %328 = vmatprep.subr.bf16.mxu0 %v327_v5  ;;  %356 = vmatprep.subr.bf16.mxu1 %v327_v5  ;;  %v339_v16 = vpack.c.bf16 %v39_v15, %v38_v14  ;;  %v343_v19 = vpack.c.bf16 %v41_v18, %v40_v17  ;;  %v42_v20 = vld [vmem:[%s538_s1 + $0x60] sm:$0xff]  ;;  %v44_v23 = vld [vmem:[%s538_s1 + $0x70] sm:$0xff]  ;;  %v45_v24 = vld [vmem:[%s538_s1 + $0x78] sm:$0xff] }
   0x7   :  { %299 = vmatprep.mubr.f32.mxu0 %v14_v9  ;;  %311 = vmatprep.mubr.f32.mxu1 %v22_v10  ;;  %v347_v22 = vpack.c.bf16 %v43_v21, %v42_v20  ;;  %v351_v25 = vpack.c.bf16 %v45_v24, %v44_v23  ;;  %v15_v26 = vld [vmem:[%s539_s0 + $0x8] sm:$0xff]  ;;  %v16_v28 = vld [vmem:[%s539_s0 + $0x10] sm:$0xff]  ;;  %v17_v30 = vld [vmem:[%s539_s0 + $0x18] sm:$0xff] }
   0x8   :  { %v23_v27 = vld [vmem:[%s539_s0 + $0x48] sm:$0xff]  ;;  %v24_v29 = vld [vmem:[%s539_s0 + $0x50] sm:$0xff]  ;;  %v25_v31 = vld [vmem:[%s539_s0 + $0x58] sm:$0xff] }
   0x9   :  { %330 = vmatpush3.bf16.msra.mxu0 %v327_v5  ;;  %364 = vmatpush3.bf16.msra.mxu1 %v327_v5  ;;  %v18_v32 = vld [vmem:[%s539_s0 + $0x20] sm:$0xff]  ;;  %v19_v34 = vld [vmem:[%s539_s0 + $0x28] sm:$0xff]  ;;  %v20_v36 = vld [vmem:[%s539_s0 + $0x30] sm:$0xff] }
   0xa   :  { %332 = vmatprep.subr.bf16.mxu0 %v331_v8  ;;  %357 = vmatprep.subr.bf16.mxu1 %v331_v8  ;;  %v26_v33 = vld [vmem:[%s539_s0 + $0x60] sm:$0xff]  ;;  %v27_v35 = vld [vmem:[%s539_s0 + $0x68] sm:$0xff]  ;;  %v28_v37 = vld [vmem:[%s539_s0 + $0x70] sm:$0xff] }
   0xb   :  { %v21_v38 = vld [vmem:[%s539_s0 + $0x38] sm:$0xff]  ;;  %v234_v40 = vld [vmem:[%s540_s2] ss:$0 sm:$0xff] }
   0xc   :  { %v29_v39 = vld [vmem:[%s539_s0 + $0x78] sm:$0xff] }
   0xd   :  { %334 = vmatpush3.bf16.msra.mxu0 %v331_v8  ;;  %365 = vmatpush3.bf16.msra.mxu1 %v331_v8 }
   0xe   :  { %336 = vmatprep.subr.bf16.mxu0 %v335_v13  ;;  %358 = vmatprep.subr.bf16.mxu1 %v335_v13 }
  0x11   :  { %338 = vmatpush3.bf16.msra.mxu0 %v335_v13  ;;  %366 = vmatpush3.bf16.msra.mxu1 %v335_v13 }
  0x12   :  { %340 = vmatprep.subr.bf16.mxu0 %v339_v16  ;;  %359 = vmatprep.subr.bf16.mxu1 %v339_v16 }
  0x15   :  { %342 = vmatpush3.bf16.msra.mxu0 %v339_v16  ;;  %367 = vmatpush3.bf16.msra.mxu1 %v339_v16 }
  0x16   :  { %344 = vmatprep.subr.bf16.mxu0 %v343_v19  ;;  %360 = vmatprep.subr.bf16.mxu1 %v343_v19 }
  0x19   :  { %346 = vmatpush3.bf16.msra.mxu0 %v343_v19  ;;  %368 = vmatpush3.bf16.msra.mxu1 %v343_v19 }
  0x1a   :  { %348 = vmatprep.subr.bf16.mxu0 %v347_v22  ;;  %361 = vmatprep.subr.bf16.mxu1 %v347_v22 }
  0x1d   :  { %350 = vmatpush3.bf16.msra.mxu0 %v347_v22  ;;  %369 = vmatpush3.bf16.msra.mxu1 %v347_v22 }
  0x1e   :  { %352 = vmatprep.subr.bf16.mxu0 %v351_v25  ;;  %362 = vmatprep.subr.bf16.mxu1 %v351_v25 }
  0x21   :  { %354 = vmatpush3.bf16.msra.mxu0 %v351_v25  ;;  %370 = vmatpush3.bf16.msra.mxu1 %v351_v25 }
  0x24   :  { %300 = vmatmul.mubr.f32.vlgmr.msra.gmra.mrb[0].mxu0 %v15_v26  ;;  %312 = vmatmul.mubr.f32.vlgmr.msra.gmra.mrb[0].mxu1 %v23_v27 }
  0x25   :  { %302 = vmatprep.mubr.f32.mxu0 %v16_v28  ;;  %314 = vmatprep.mubr.f32.mxu1 %v24_v29 }
  0x28   :  { %303 = vmatmul.mubr.f32.gmra.mrb[2].mxu0 %v17_v30  ;;  %315 = vmatmul.mubr.f32.gmra.mrb[2].mxu1 %v25_v31 }
  0x29   :  { %305 = vmatprep.mubr.f32.mxu0 %v18_v32  ;;  %317 = vmatprep.mubr.f32.mxu1 %v26_v33 }
  0x2c   :  { %306 = vmatmul.mubr.f32.gmra.mrb[4].mxu0 %v19_v34  ;;  %318 = vmatmul.mubr.f32.gmra.mrb[4].mxu1 %v27_v35 }
  0x2d   :  { %308 = vmatprep.mubr.f32.mxu0 %v20_v36  ;;  %320 = vmatprep.mubr.f32.mxu1 %v28_v37 }
  0x30   :  { %309 = vmatmul.mubr.f32.gmra.mrb[6].mxu0 %v21_v38  ;;  %321 = vmatmul.mubr.f32.gmra.mrb[6].mxu1 %v29_v39 }
  0xf7   :  { %v301_v41 = vpop.f32.mrb[0].mxu0  ;;  %v313_v42 = vpop.f32.mrb[0].mxu1 }
  0xf8   :  { %v125_v43 = vadd.f32 %v301_v41, %v234_v40  ;;  %v165_v44 = vadd.f32 %v313_v42, %v234_v40  ;;  %v119_v45 = vpop.f32.mrb[1].mxu0  ;;  %v159_v46 = vpop.f32.mrb[1].mxu1 }
  0xf9   :  { %v120_v47 = vadd.f32 %v234_v40, %v119_v45  ;;  %v160_v48 = vadd.f32 %v234_v40, %v159_v46 }
  0xfa   :  { %v199_v49 = vmax.f32 %v125_v43, 0.0  ;;  %v207_v50 = vmax.f32 %v165_v44, 0.0 }
  0xfb   :  { %v198_v51 = vmax.f32 %v120_v47, 0.0  ;;  %v206_v52 = vmax.f32 %v160_v48, 0.0  ;;  %v304_v53 = vpop.f32.mrb[2].mxu0  ;;  %v316_v54 = vpop.f32.mrb[2].mxu1 }
  0xfc   :  { %215 = vst [vmem:[%s541_s3 + $0x8] sm:$0xff] %v199_v49  ;;  %223 = vst [vmem:[%s541_s3 + $0x48] sm:$0xff] %v207_v50  ;;  %v135_v55 = vadd.f32 %v304_v53, %v234_v40  ;;  %v175_v56 = vadd.f32 %v316_v54, %v234_v40  ;;  %v129_v57 = vpop.f32.mrb[3].mxu0  ;;  %v169_v58 = vpop.f32.mrb[3].mxu1 }
  0xfd   :  { %214 = vst [vmem:[%s541_s3] sm:$0xff] %v198_v51  ;;  %222 = vst [vmem:[%s541_s3 + $0x40] sm:$0xff] %v206_v52  ;;  %v130_v59 = vadd.f32 %v234_v40, %v129_v57  ;;  %v170_v60 = vadd.f32 %v234_v40, %v169_v58 }
  0xfe   :  { %v201_v61 = vmax.f32 %v135_v55, 0.0  ;;  %v209_v62 = vmax.f32 %v175_v56, 0.0 }
  0xff   :  { %v200_v63 = vmax.f32 %v130_v59, 0.0  ;;  %v208_v0 = vmax.f32 %v170_v60, 0.0  ;;  %v307_v1 = vpop.f32.mrb[4].mxu0  ;;  %v319_v2 = vpop.f32.mrb[4].mxu1 }
 0x100   :  { %217 = vst [vmem:[%s541_s3 + $0x18] sm:$0xff] %v201_v61  ;;  %225 = vst [vmem:[%s541_s3 + $0x58] sm:$0xff] %v209_v62  ;;  %v145_v3 = vadd.f32 %v307_v1, %v234_v40  ;;  %v185_v4 = vadd.f32 %v319_v2, %v234_v40  ;;  %v139_v5 = vpop.f32.mrb[5].mxu0  ;;  %v179_v6 = vpop.f32.mrb[5].mxu1 }
 0x101   :  { %216 = vst [vmem:[%s541_s3 + $0x10] sm:$0xff] %v200_v63  ;;  %224 = vst [vmem:[%s541_s3 + $0x50] sm:$0xff] %v208_v0  ;;  %v140_v7 = vadd.f32 %v234_v40, %v139_v5  ;;  %v180_v8 = vadd.f32 %v234_v40, %v179_v6 }
 0x102   :  { %v203_v9 = vmax.f32 %v145_v3, 0.0  ;;  %v211_v10 = vmax.f32 %v185_v4, 0.0 }
 0x103   :  { %v202_v11 = vmax.f32 %v140_v7, 0.0  ;;  %v210_v12 = vmax.f32 %v180_v8, 0.0  ;;  %v310_v13 = vpop.f32.mrb[6].mxu0  ;;  %v322_v14 = vpop.f32.mrb[6].mxu1 }
 0x104   :  { %219 = vst [vmem:[%s541_s3 + $0x28] sm:$0xff] %v203_v9  ;;  %227 = vst [vmem:[%s541_s3 + $0x68] sm:$0xff] %v211_v10  ;;  %v155_v15 = vadd.f32 %v310_v13, %v234_v40  ;;  %v195_v16 = vadd.f32 %v322_v14, %v234_v40  ;;  %v149_v17 = vpop.f32.mrb[7].mxu0  ;;  %v189_v18 = vpop.f32.mrb[7].mxu1 }
 0x105   :  { %218 = vst [vmem:[%s541_s3 + $0x20] sm:$0xff] %v202_v11  ;;  %226 = vst [vmem:[%s541_s3 + $0x60] sm:$0xff] %v210_v12  ;;  %v150_v19 = vadd.f32 %v234_v40, %v149_v17  ;;  %v190_v20 = vadd.f32 %v234_v40, %v189_v18 }
 0x106   :  { %v205_v21 = vmax.f32 %v155_v15, 0.0  ;;  %v213_v22 = vmax.f32 %v195_v16, 0.0 }
 0x107   :  { %v204_v23 = vmax.f32 %v150_v19, 0.0  ;;  %v212_v24 = vmax.f32 %v190_v20, 0.0 }
 0x108   :  { %221 = vst [vmem:[%s541_s3 + $0x38] sm:$0xff] %v205_v21  ;;  %229 = vst [vmem:[%s541_s3 + $0x78] sm:$0xff] %v213_v22 }
 0x109   :  { %220 = vst [vmem:[%s541_s3 + $0x30] sm:$0xff] %v204_v23  ;;  %228 = vst [vmem:[%s541_s3 + $0x70] sm:$0xff] %v212_v24 }

// kernel: graphite_ae_forward.14
= control target key start
LH: loop header
LB: loop body
LE: loop exit
PB: predicated region body
PF: predicated region fallthrough
CT: control target
= control target key end

     0   :  { %v337_v3 = vmov 0.0   ;;  %s561_s1 = inlined_call_operand.vmem [shape: f32[128,256], index: 1, kind: input, shape index: {}]   ;;  %s562_s0 = inlined_call_operand.vmem [shape: f32[128,128], index: 0, kind: input, shape index: {}]   ;;  %s563_s2 = inlined_call_operand.vmem [shape: f32[128,128], index: 2, kind: output, shape index: {}]  }
   0x1   :  { %v28_v0 = vld [vmem:[%s561_s1 + $0x8] sm:$0xff]  ;;  %v30_v1 = vld [vmem:[%s561_s1 + $0x18] sm:$0xff]  ;;  %v27_v2 = vld [vmem:[%s561_s1] sm:$0xff]  ;;  %123 = vmatprep.mubr.f32.mxu0 %v337_v3  ;;  %171 = vmatprep.mubr.f32.mxu1 %v337_v3 }
   0x2   :  { %v288_v4 = vpack.c.bf16 %v30_v1, %v28_v0  ;;  %v29_v5 = vld [vmem:[%s561_s1 + $0x10] sm:$0xff]  ;;  %v32_v6 = vld [vmem:[%s561_s1 + $0x28] sm:$0xff]  ;;  %v34_v7 = vld [vmem:[%s561_s1 + $0x38] sm:$0xff] }
   0x3   :  { %v290_v8 = vpack.c.bf16 %v29_v5, %v27_v2  ;;  %v292_v9 = vpack.c.bf16 %v34_v7, %v32_v6  ;;  %v31_v10 = vld [vmem:[%s561_s1 + $0x20] sm:$0xff]  ;;  %v33_v11 = vld [vmem:[%s561_s1 + $0x30] sm:$0xff]  ;;  %v36_v12 = vld [vmem:[%s561_s1 + $0x48] sm:$0xff] }
   0x4   :  { %289 = vmatprep.subr.bf16.mxu0 %v288_v4  ;;  %320 = vmatprep.subr.bf16.mxu1 %v288_v4  ;;  %v38_v13 = vld [vmem:[%s561_s1 + $0x58] sm:$0xff]  ;;  %v294_v14 = vpack.c.bf16 %v33_v11, %v31_v10  ;;  %v35_v16 = vld [vmem:[%s561_s1 + $0x40] sm:$0xff]  ;;  %v37_v17 = vld [vmem:[%s561_s1 + $0x50] sm:$0xff] }
   0x5   :  { %291 = vmatpush1.bf16.msra.mxu0 %v290_v8  ;;  %328 = vmatpush1.bf16.msra.mxu1 %v290_v8  ;;  %v296_v15 = vpack.c.bf16 %v38_v13, %v36_v12  ;;  %v40_v18 = vld [vmem:[%s561_s1 + $0x68] sm:$0xff]  ;;  %v42_v19 = vld [vmem:[%s561_s1 + $0x78] sm:$0xff]  ;;  %v298_v20 = vpack.c.bf16 %v37_v17, %v35_v16  ;;  %v39_v22 = vld [vmem:[%s561_s1 + $0x60] sm:$0xff] }
   0x6   :  { %293 = vmatprep.subr.bf16.mxu0 %v292_v9  ;;  %321 = vmatprep.subr.bf16.mxu1 %v292_v9  ;;  %v300_v21 = vpack.c.bf16 %v42_v19, %v40_v18  ;;  %v41_v23 = vld [vmem:[%s561_s1 + $0x70] sm:$0xff]  ;;  %v44_v24 = vld [vmem:[%s561_s1 + $0x88] sm:$0xff]  ;;  %v46_v25 = vld [vmem:[%s561_s1 + $0x98] sm:$0xff] }
   0x7   :  { %v302_v26 = vpack.c.bf16 %v41_v23, %v39_v22  ;;  %v304_v27 = vpack.c.bf16 %v46_v25, %v44_v24  ;;  %v43_v28 = vld [vmem:[%s561_s1 + $0x80] sm:$0xff]  ;;  %v45_v29 = vld [vmem:[%s561_s1 + $0x90] sm:$0xff]  ;;  %v48_v30 = vld [vmem:[%s561_s1 + $0xa8] sm:$0xff] }
   0x8   :  { %v50_v31 = vld [vmem:[%s561_s1 + $0xb8] sm:$0xff]  ;;  %v306_v32 = vpack.c.bf16 %v45_v29, %v43_v28  ;;  %v47_v34 = vld [vmem:[%s561_s1 + $0xa0] sm:$0xff]  ;;  %v49_v35 = vld [vmem:[%s561_s1 + $0xb0] sm:$0xff] }
   0x9   :  { %295 = vmatpush1.bf16.msra.mxu0 %v294_v14  ;;  %329 = vmatpush1.bf16.msra.mxu1 %v294_v14  ;;  %v308_v33 = vpack.c.bf16 %v50_v31, %v48_v30  ;;  %v52_v36 = vld [vmem:[%s561_s1 + $0xc8] sm:$0xff]  ;;  %v54_v37 = vld [vmem:[%s561_s1 + $0xd8] sm:$0xff]  ;;  %v310_v38 = vpack.c.bf16 %v49_v35, %v47_v34  ;;  %v51_v40 = vld [vmem:[%s561_s1 + $0xc0] sm:$0xff] }
   0xa   :  { %297 = vmatprep.subr.bf16.mxu0 %v296_v15  ;;  %322 = vmatprep.subr.bf16.mxu1 %v296_v15  ;;  %v312_v39 = vpack.c.bf16 %v54_v37, %v52_v36  ;;  %v53_v41 = vld [vmem:[%s561_s1 + $0xd0] sm:$0xff]  ;;  %v56_v42 = vld [vmem:[%s561_s1 + $0xe8] sm:$0xff]  ;;  %v58_v43 = vld [vmem:[%s561_s1 + $0xf8] sm:$0xff] }
   0xb   :  { %v314_v44 = vpack.c.bf16 %v53_v41, %v51_v40  ;;  %v316_v45 = vpack.c.bf16 %v58_v43, %v56_v42  ;;  %v55_v46 = vld [vmem:[%s561_s1 + $0xe0] sm:$0xff]  ;;  %v57_v47 = vld [vmem:[%s561_s1 + $0xf0] sm:$0xff]  ;;  %v12_v51 = vld [vmem:[%s562_s0 + $0x8] sm:$0xff] }
   0xc   :  { %v318_v48 = vpack.c.bf16 %v57_v47, %v55_v46  ;;  %v11_v49 = vld [vmem:[%s562_s0] sm:$0xff]  ;;  %v20_v52 = vld [vmem:[%s562_s0 + $0x48] sm:$0xff]  ;;  %v13_v53 = vld [vmem:[%s562_s0 + $0x10] sm:$0xff] }
   0xd   :  { %299 = vmatpush1.bf16.msra.mxu0 %v298_v20  ;;  %330 = vmatpush1.bf16.msra.mxu1 %v298_v20  ;;  %v19_v50 = vld [vmem:[%s562_s0 + $0x40] sm:$0xff]  ;;  %v21_v54 = vld [vmem:[%s562_s0 + $0x50] sm:$0xff]  ;;  %v14_v55 = vld [vmem:[%s562_s0 + $0x18] sm:$0xff] }
   0xe   :  { %301 = vmatprep.subr.bf16.mxu0 %v300_v21  ;;  %323 = vmatprep.subr.bf16.mxu1 %v300_v21  ;;  %v22_v56 = vld [vmem:[%s562_s0 + $0x58] sm:$0xff]  ;;  %v15_v57 = vld [vmem:[%s562_s0 + $0x20] sm:$0xff]  ;;  %v16_v59 = vld [vmem:[%s562_s0 + $0x28] sm:$0xff] }
   0xf   :  { %v23_v58 = vld [vmem:[%s562_s0 + $0x60] sm:$0xff]  ;;  %v24_v60 = vld [vmem:[%s562_s0 + $0x68] sm:$0xff]  ;;  %v17_v61 = vld [vmem:[%s562_s0 + $0x30] sm:$0xff] }
  0x10   :  { %v25_v62 = vld [vmem:[%s562_s0 + $0x70] sm:$0xff]  ;;  %v18_v63 = vld [vmem:[%s562_s0 + $0x38] sm:$0xff] }
  0x11   :  { %303 = vmatpush1.bf16.msra.mxu0 %v302_v26  ;;  %331 = vmatpush1.bf16.msra.mxu1 %v302_v26  ;;  %v26_v0 = vld [vmem:[%s562_s0 + $0x78] sm:$0xff] }
  0x12   :  { %305 = vmatprep.subr.bf16.mxu0 %v304_v27  ;;  %324 = vmatprep.subr.bf16.mxu1 %v304_v27 }
  0x15   :  { %307 = vmatpush1.bf16.msra.mxu0 %v306_v32  ;;  %332 = vmatpush1.bf16.msra.mxu1 %v306_v32 }
  0x16   :  { %309 = vmatprep.subr.bf16.mxu0 %v308_v33  ;;  %325 = vmatprep.subr.bf16.mxu1 %v308_v33 }
  0x19   :  { %311 = vmatpush1.bf16.msra.mxu0 %v310_v38  ;;  %333 = vmatpush1.bf16.msra.mxu1 %v310_v38 }
  0x1a   :  { %313 = vmatprep.subr.bf16.mxu0 %v312_v39  ;;  %326 = vmatprep.subr.bf16.mxu1 %v312_v39 }
  0x1d   :  { %315 = vmatpush1.bf16.msra.mxu0 %v314_v44  ;;  %334 = vmatpush1.bf16.msra.mxu1 %v314_v44 }
  0x1e   :  { %317 = vmatprep.subr.bf16.mxu0 %v316_v45  ;;  %327 = vmatprep.subr.bf16.mxu1 %v316_v45 }
  0x21   :  { %319 = vmatpush1.bf16.msra.mxu0 %v318_v48  ;;  %335 = vmatpush1.bf16.msra.mxu1 %v318_v48 }
  0x24   :  { %124 = vmatmul.mubr.f32.vlgmr.msra.gmra.mrb[0].mxu0 %v11_v49  ;;  %172 = vmatmul.mubr.f32.vlgmr.msra.gmra.mrb[0].mxu1 %v19_v50 }
  0x25   :  { %129 = vmatprep.mubr.f32.mxu0 %v337_v3  ;;  %177 = vmatprep.mubr.f32.mxu1 %v337_v3 }
  0x28   :  { %130 = vmatmul.mubr.f32.gmra.mrb[2].mxu0 %v12_v51  ;;  %178 = vmatmul.mubr.f32.gmra.mrb[2].mxu1 %v20_v52 }
  0x29   :  { %135 = vmatprep.mubr.f32.mxu0 %v337_v3  ;;  %183 = vmatprep.mubr.f32.mxu1 %v337_v3 }
  0x2c   :  { %136 = vmatmul.mubr.f32.gmra.mrb[4].mxu0 %v13_v53  ;;  %184 = vmatmul.mubr.f32.gmra.mrb[4].mxu1 %v21_v54 }
  0x2d   :  { %141 = vmatprep.mubr.f32.mxu0 %v337_v3  ;;  %189 = vmatprep.mubr.f32.mxu1 %v337_v3 }
  0x30   :  { %142 = vmatmul.mubr.f32.gmra.mrb[6].mxu0 %v14_v55  ;;  %190 = vmatmul.mubr.f32.gmra.mrb[6].mxu1 %v22_v56 }
  0x31   :  { %147 = vmatprep.mubr.f32.mxu0 %v337_v3  ;;  %195 = vmatprep.mubr.f32.mxu1 %v337_v3 }
  0x34   :  { %148 = vmatmul.mubr.f32.gmra.mrb[8].mxu0 %v15_v57  ;;  %196 = vmatmul.mubr.f32.gmra.mrb[8].mxu1 %v23_v58 }
  0x35   :  { %153 = vmatprep.mubr.f32.mxu0 %v337_v3  ;;  %201 = vmatprep.mubr.f32.mxu1 %v337_v3 }
  0x38   :  { %154 = vmatmul.mubr.f32.gmra.mrb[10].mxu0 %v16_v59  ;;  %202 = vmatmul.mubr.f32.gmra.mrb[10].mxu1 %v24_v60 }
  0x39   :  { %159 = vmatprep.mubr.f32.mxu0 %v337_v3  ;;  %207 = vmatprep.mubr.f32.mxu1 %v337_v3 }
  0x3c   :  { %160 = vmatmul.mubr.f32.gmra.mrb[12].mxu0 %v17_v61  ;;  %208 = vmatmul.mubr.f32.gmra.mrb[12].mxu1 %v25_v62 }
  0x3d   :  { %165 = vmatprep.mubr.f32.mxu0 %v337_v3  ;;  %213 = vmatprep.mubr.f32.mxu1 %v337_v3 }
  0x40   :  { %166 = vmatmul.mubr.f32.gmra.mrb[14].mxu0 %v18_v63  ;;  %214 = vmatmul.mubr.f32.gmra.mrb[14].mxu1 %v26_v0 }
  0xf7   :  { %v125_v1 = vpop.f32.mrb[0].mxu0  ;;  %v173_v2 = vpop.f32.mrb[0].mxu1 }
  0xf8   :  { %v220_v4 = vmax.f32 %v125_v1, 0.0  ;;  %v228_v5 = vmax.f32 %v173_v2, 0.0  ;;  %v127_v6 = vpop.f32.mrb[1].mxu0  ;;  %v175_v7 = vpop.f32.mrb[1].mxu1 }
  0xf9   :  { %v236_v8 = vmax.f32 %v127_v6, 0.0  ;;  %v244_v9 = vmax.f32 %v175_v7, 0.0 }
  0xfb   :  { %v252_v10 = vadd.f32 %v236_v8, %v220_v4  ;;  %v260_v3 = vadd.f32 %v244_v9, %v228_v5  ;;  %v131_v11 = vpop.f32.mrb[2].mxu0  ;;  %v179_v12 = vpop.f32.mrb[2].mxu1 }
  0xfc   :  { %v221_v13 = vmax.f32 %v131_v11, 0.0  ;;  %v229_v14 = vmax.f32 %v179_v12, 0.0  ;;  %v133_v15 = vpop.f32.mrb[3].mxu0  ;;  %v181_v16 = vpop.f32.mrb[3].mxu1 }
  0xfd   :  { %268 = vst [vmem:[%s563_s2] sm:$0xff] %v252_v10  ;;  %276 = vst [vmem:[%s563_s2 + $0x40] sm:$0xff] %v260_v3  ;;  %v237_v17 = vmax.f32 %v133_v15, 0.0  ;;  %v245_v18 = vmax.f32 %v181_v16, 0.0 }
  0xff   :  { %v253_v19 = vadd.f32 %v237_v17, %v221_v13  ;;  %v261_v20 = vadd.f32 %v245_v18, %v229_v14  ;;  %v137_v21 = vpop.f32.mrb[4].mxu0  ;;  %v185_v22 = vpop.f32.mrb[4].mxu1 }
 0x100   :  { %v222_v23 = vmax.f32 %v137_v21, 0.0  ;;  %v230_v24 = vmax.f32 %v185_v22, 0.0  ;;  %v139_v25 = vpop.f32.mrb[5].mxu0  ;;  %v187_v26 = vpop.f32.mrb[5].mxu1 }
 0x101   :  { %269 = vst [vmem:[%s563_s2 + $0x8] sm:$0xff] %v253_v19  ;;  %277 = vst [vmem:[%s563_s2 + $0x48] sm:$0xff] %v261_v20  ;;  %v238_v27 = vmax.f32 %v139_v25, 0.0  ;;  %v246_v28 = vmax.f32 %v187_v26, 0.0 }
 0x103   :  { %v254_v29 = vadd.f32 %v238_v27, %v222_v23  ;;  %v262_v30 = vadd.f32 %v246_v28, %v230_v24  ;;  %v143_v31 = vpop.f32.mrb[6].mxu0  ;;  %v191_v32 = vpop.f32.mrb[6].mxu1 }
 0x104   :  { %v223_v33 = vmax.f32 %v143_v31, 0.0  ;;  %v231_v34 = vmax.f32 %v191_v32, 0.0  ;;  %v145_v35 = vpop.f32.mrb[7].mxu0  ;;  %v193_v36 = vpop.f32.mrb[7].mxu1 }
 0x105   :  { %270 = vst [vmem:[%s563_s2 + $0x10] sm:$0xff] %v254_v29  ;;  %278 = vst [vmem:[%s563_s2 + $0x50] sm:$0xff] %v262_v30  ;;  %v239_v37 = vmax.f32 %v145_v35, 0.0  ;;  %v247_v38 = vmax.f32 %v193_v36, 0.0 }
 0x107   :  { %v255_v39 = vadd.f32 %v239_v37, %v223_v33  ;;  %v263_v40 = vadd.f32 %v247_v38, %v231_v34  ;;  %v149_v41 = vpop.f32.mrb[8].mxu0  ;;  %v197_v42 = vpop.f32.mrb[8].mxu1 }
 0x108   :  { %v224_v43 = vmax.f32 %v149_v41, 0.0  ;;  %v232_v44 = vmax.f32 %v197_v42, 0.0  ;;  %v151_v45 = vpop.f32.mrb[9].mxu0  ;;  %v199_v46 = vpop.f32.mrb[9].mxu1 }
 0x109   :  { %271 = vst [vmem:[%s563_s2 + $0x18] sm:$0xff] %v255_v39  ;;  %279 = vst [vmem:[%s563_s2 + $0x58] sm:$0xff] %v263_v40  ;;  %v240_v47 = vmax.f32 %v151_v45, 0.0  ;;  %v248_v48 = vmax.f32 %v199_v46, 0.0 }
 0x10b   :  { %v256_v49 = vadd.f32 %v240_v47, %v224_v43  ;;  %v264_v50 = vadd.f32 %v248_v48, %v232_v44  ;;  %v155_v51 = vpop.f32.mrb[10].mxu0  ;;  %v203_v52 = vpop.f32.mrb[10].mxu1 }
 0x10c   :  { %v225_v53 = vmax.f32 %v155_v51, 0.0  ;;  %v233_v54 = vmax.f32 %v203_v52, 0.0  ;;  %v157_v55 = vpop.f32.mrb[11].mxu0  ;;  %v205_v56 = vpop.f32.mrb[11].mxu1 }
 0x10d   :  { %272 = vst [vmem:[%s563_s2 + $0x20] sm:$0xff] %v256_v49  ;;  %280 = vst [vmem:[%s563_s2 + $0x60] sm:$0xff] %v264_v50  ;;  %v241_v57 = vmax.f32 %v157_v55, 0.0  ;;  %v249_v58 = vmax.f32 %v205_v56, 0.0 }
 0x10f   :  { %v257_v59 = vadd.f32 %v241_v57, %v225_v53  ;;  %v265_v60 = vadd.f32 %v249_v58, %v233_v54  ;;  %v161_v61 = vpop.f32.mrb[12].mxu0  ;;  %v209_v62 = vpop.f32.mrb[12].mxu1 }
 0x110   :  { %v226_v63 = vmax.f32 %v161_v61, 0.0  ;;  %v234_v0 = vmax.f32 %v209_v62, 0.0  ;;  %v163_v1 = vpop.f32.mrb[13].mxu0  ;;  %v211_v2 = vpop.f32.mrb[13].mxu1 }
 0x111   :  { %273 = vst [vmem:[%s563_s2 + $0x28] sm:$0xff] %v257_v59  ;;  %281 = vst [vmem:[%s563_s2 + $0x68] sm:$0xff] %v265_v60  ;;  %v242_v4 = vmax.f32 %v163_v1, 0.0  ;;  %v250_v5 = vmax.f32 %v211_v2, 0.0 }
 0x113   :  { %v258_v6 = vadd.f32 %v242_v4, %v226_v63  ;;  %v266_v7 = vadd.f32 %v250_v5, %v234_v0  ;;  %v167_v8 = vpop.f32.mrb[14].mxu0  ;;  %v215_v9 = vpop.f32.mrb[14].mxu1 }
 0x114   :  { %v227_v10 = vmax.f32 %v167_v8, 0.0  ;;  %v235_v3 = vmax.f32 %v215_v9, 0.0  ;;  %v169_v11 = vpop.f32.mrb[15].mxu0  ;;  %v217_v12 = vpop.f32.mrb[15].mxu1 }
 0x115   :  { %274 = vst [vmem:[%s563_s2 + $0x30] sm:$0xff] %v258_v6  ;;  %282 = vst [vmem:[%s563_s2 + $0x70] sm:$0xff] %v266_v7  ;;  %v243_v13 = vmax.f32 %v169_v11, 0.0  ;;  %v251_v14 = vmax.f32 %v217_v12, 0.0 }
 0x117   :  { %v259_v15 = vadd.f32 %v243_v13, %v227_v10  ;;  %v267_v16 = vadd.f32 %v251_v14, %v235_v3 }
 0x119   :  { %275 = vst [vmem:[%s563_s2 + $0x38] sm:$0xff] %v259_v15  ;;  %283 = vst [vmem:[%s563_s2 + $0x78] sm:$0xff] %v267_v16 }

// kernel: graphite_ae_forward.15
= control target key start
LH: loop header
LB: loop body
LE: loop exit
PB: predicated region body
PF: predicated region fallthrough
CT: control target
= control target key end

     0   :  { %s999_s1 = inlined_call_operand.vmem [shape: f32[128,128], index: 1, kind: input, shape index: {}]   ;;  %s1000_s0 = inlined_call_operand.vmem [shape: f32[128,128], index: 0, kind: input, shape index: {}]   ;;  %s1001_s3 = inlined_call_operand.vmem [shape: f32[128,128], index: 3, kind: input, shape index: {}]   ;;  %s1002_s2 = inlined_call_operand.vmem [shape: f32[1,128], index: 2, kind: input, shape index: {}]   ;;  %s1003_s4 = inlined_call_operand.vmem [shape: f32[128,128], index: 4, kind: output, shape index: {}]  }
   0x1   :  { %v97_v0 = vld [vmem:[%s999_s1] sm:$0xff]  ;;  %v98_v1 = vld [vmem:[%s999_s1 + $0x8] sm:$0xff]  ;;  %v99_v2 = vld [vmem:[%s999_s1 + $0x10] sm:$0xff] }
   0x2   :  { %v699_v3 = vpack.c.bf16 %v98_v1, %v97_v0  ;;  %v100_v4 = vld [vmem:[%s999_s1 + $0x18] sm:$0xff]  ;;  %v101_v6 = vld [vmem:[%s999_s1 + $0x20] sm:$0xff]  ;;  %v102_v7 = vld [vmem:[%s999_s1 + $0x28] sm:$0xff] }
   0x3   :  { %v703_v5 = vpack.c.bf16 %v100_v4, %v99_v2  ;;  %v707_v8 = vpack.c.bf16 %v102_v7, %v101_v6  ;;  %v81_v9 = vld [vmem:[%s1000_s0] sm:$0xff]  ;;  %v103_v10 = vld [vmem:[%s999_s1 + $0x30] sm:$0xff]  ;;  %v104_v11 = vld [vmem:[%s999_s1 + $0x38] sm:$0xff] }
   0x4   :  { %700 = vmatprep.subr.bf16.mxu0 %v699_v3  ;;  %619 = vmatprep.mubr.f32.mxu0 %v81_v9  ;;  %v711_v12 = vpack.c.bf16 %v104_v11, %v103_v10  ;;  %v105_v13 = vld [vmem:[%s999_s1 + $0x40] sm:$0xff]  ;;  %v106_v14 = vld [vmem:[%s999_s1 + $0x48] sm:$0xff]  ;;  %v107_v18 = vld [vmem:[%s999_s1 + $0x50] sm:$0xff] }
   0x5   :  { %702 = vmatpush3.bf16.msra.mxu0 %v699_v3  ;;  %v281_v15 = vld [vmem:[%s1001_s3] sm:$0xff]  ;;  %v282_v16 = vld [vmem:[%s1001_s3 + $0x8] sm:$0xff]  ;;  %v715_v17 = vpack.c.bf16 %v106_v14, %v105_v13  ;;  %v108_v19 = vld [vmem:[%s999_s1 + $0x58] sm:$0xff] }
   0x6   :  { %704 = vmatprep.subr.bf16.mxu0 %v703_v5  ;;  %297 = vxpose.xlu0.b32.start [1/16] %v281_v15, 128  ;;  %v283_v20 = vld [vmem:[%s1001_s3 + $0x10] sm:$0xff]  ;;  %v719_v21 = vpack.c.bf16 %v108_v19, %v107_v18  ;;  %v109_v22 = vld [vmem:[%s999_s1 + $0x60] sm:$0xff]  ;;  %v110_v23 = vld [vmem:[%s999_s1 + $0x68] sm:$0xff] }
   0x7   :  { %v284_v24 = vld [vmem:[%s1001_s3 + $0x18] sm:$0xff]  ;;  %v723_v25 = vpack.c.bf16 %v110_v23, %v109_v22  ;;  %v111_v26 = vld [vmem:[%s999_s1 + $0x70] sm:$0xff]  ;;  %v285_v28 = vld [vmem:[%s1001_s3 + $0x20] sm:$0xff] }
   0x8   :  { %v112_v27 = vld [vmem:[%s999_s1 + $0x78] sm:$0xff]  ;;  %v286_v30 = vld [vmem:[%s1001_s3 + $0x28] sm:$0xff]  ;;  %v287_v32 = vld [vmem:[%s1001_s3 + $0x30] sm:$0xff] }
   0x9   :  { %706 = vmatpush3.bf16.msra.mxu0 %v703_v5  ;;  %v727_v29 = vpack.c.bf16 %v112_v27, %v111_v26  ;;  %v82_v31 = vld [vmem:[%s1000_s0 + $0x8] sm:$0xff]  ;;  %v83_v33 = vld [vmem:[%s1000_s0 + $0x10] sm:$0xff]  ;;  %v84_v34 = vld [vmem:[%s1000_s0 + $0x18] sm:$0xff] }
   0xa   :  { %708 = vmatprep.subr.bf16.mxu0 %v707_v8  ;;  %298 = vxpose.xlu0.b32.cont [2/16] %v282_v16, 128  ;;  %v288_v35 = vld [vmem:[%s1001_s3 + $0x38] sm:$0xff]  ;;  %v85_v36 = vld [vmem:[%s1000_s0 + $0x20] sm:$0xff]  ;;  %v86_v37 = vld [vmem:[%s1000_s0 + $0x28] sm:$0xff] }
   0xb   :  { %v289_v38 = vld [vmem:[%s1001_s3 + $0x40] sm:$0xff]  ;;  %v87_v39 = vld [vmem:[%s1000_s0 + $0x30] sm:$0xff]  ;;  %v88_v40 = vld [vmem:[%s1000_s0 + $0x38] sm:$0xff] }
   0xc   :  { %v290_v41 = vld [vmem:[%s1001_s3 + $0x48] sm:$0xff]  ;;  %v89_v42 = vld [vmem:[%s1000_s0 + $0x40] sm:$0xff]  ;;  %v291_v44 = vld [vmem:[%s1001_s3 + $0x50] sm:$0xff] }
   0xd   :  { %710 = vmatpush3.bf16.msra.mxu0 %v707_v8  ;;  %v90_v43 = vld [vmem:[%s1000_s0 + $0x48] sm:$0xff]  ;;  %v91_v45 = vld [vmem:[%s1000_s0 + $0x50] sm:$0xff]  ;;  %v92_v46 = vld [vmem:[%s1000_s0 + $0x58] sm:$0xff] }
   0xe   :  { %712 = vmatprep.subr.bf16.mxu0 %v711_v12  ;;  %299 = vxpose.xlu0.b32.cont [3/16] %v283_v20, 128  ;;  %v292_v47 = vld [vmem:[%s1001_s3 + $0x58] sm:$0xff]  ;;  %v93_v48 = vld [vmem:[%s1000_s0 + $0x60] sm:$0xff]  ;;  %v94_v49 = vld [vmem:[%s1000_s0 + $0x68] sm:$0xff] }
   0xf   :  { %v293_v50 = vld [vmem:[%s1001_s3 + $0x60] sm:$0xff]  ;;  %v95_v51 = vld [vmem:[%s1000_s0 + $0x70] sm:$0xff]  ;;  %v96_v52 = vld [vmem:[%s1000_s0 + $0x78] sm:$0xff] }
  0x10   :  { %v294_v53 = vld [vmem:[%s1001_s3 + $0x68] sm:$0xff]  ;;  %v295_v54 = vld [vmem:[%s1001_s3 + $0x70] sm:$0xff]  ;;  %v296_v55 = vld [vmem:[%s1001_s3 + $0x78] sm:$0xff] }
  0x11   :  { %714 = vmatpush3.bf16.msra.mxu0 %v711_v12  ;;  %v522_v61 = vld [vmem:[%s1002_s2] ss:$0 sm:$0xff] }
  0x12   :  { %716 = vmatprep.subr.bf16.mxu0 %v715_v17  ;;  %300 = vxpose.xlu0.b32.cont [4/16] %v284_v24, 128 }
  0x15   :  { %718 = vmatpush3.bf16.msra.mxu0 %v715_v17 }
  0x16   :  { %720 = vmatprep.subr.bf16.mxu0 %v719_v21  ;;  %301 = vxpose.xlu0.b32.cont [5/16] %v285_v28, 128 }
  0x19   :  { %722 = vmatpush3.bf16.msra.mxu0 %v719_v21 }
  0x1a   :  { %724 = vmatprep.subr.bf16.mxu0 %v723_v25  ;;  %302 = vxpose.xlu0.b32.cont [6/16] %v286_v30, 128 }
  0x1d   :  { %726 = vmatpush3.bf16.msra.mxu0 %v723_v25 }
  0x1e   :  { %728 = vmatprep.subr.bf16.mxu0 %v727_v29  ;;  %303 = vxpose.xlu0.b32.cont [7/16] %v287_v32, 128 }
  0x21   :  { %730 = vmatpush3.bf16.msra.mxu0 %v727_v29 }
  0x22   :  { %304 = vxpose.xlu0.b32.cont [8/16] %v288_v35, 128 }
  0x24   :  { %620 = vmatmul.mubr.f32.vlgmr.msra.gmra.mrb[0].mxu0 %v82_v31 }
  0x25   :  { %622 = vmatprep.mubr.f32.mxu0 %v83_v33 }
  0x26   :  { %305 = vxpose.xlu0.b32.cont [9/16] %v289_v38, 128 }
  0x28   :  { %623 = vmatmul.mubr.f32.gmra.mrb[2].mxu0 %v84_v34 }
  0x29   :  { %625 = vmatprep.mubr.f32.mxu0 %v85_v36 }
  0x2a   :  { %306 = vxpose.xlu0.b32.cont [10/16] %v290_v41, 128 }
  0x2c   :  { %626 = vmatmul.mubr.f32.gmra.mrb[4].mxu0 %v86_v37 }
  0x2d   :  { %628 = vmatprep.mubr.f32.mxu0 %v87_v39 }
  0x2e   :  { %307 = vxpose.xlu0.b32.cont [11/16] %v291_v44, 128 }
  0x30   :  { %629 = vmatmul.mubr.f32.gmra.mrb[6].mxu0 %v88_v40 }
  0x31   :  { %631 = vmatprep.mubr.f32.mxu0 %v89_v42 }
  0x32   :  { %308 = vxpose.xlu0.b32.cont [12/16] %v292_v47, 128 }
  0x34   :  { %632 = vmatmul.mubr.f32.gmra.mrb[8].mxu0 %v90_v43 }
  0x35   :  { %634 = vmatprep.mubr.f32.mxu0 %v91_v45 }
  0x36   :  { %309 = vxpose.xlu0.b32.cont [13/16] %v293_v50, 128 }
  0x38   :  { %635 = vmatmul.mubr.f32.gmra.mrb[10].mxu0 %v92_v46 }
  0x39   :  { %637 = vmatprep.mubr.f32.mxu0 %v93_v48 }
  0x3a   :  { %310 = vxpose.xlu0.b32.cont [14/16] %v294_v53, 128 }
  0x3c   :  { %638 = vmatmul.mubr.f32.gmra.mrb[12].mxu0 %v94_v49 }
  0x3d   :  { %640 = vmatprep.mubr.f32.mxu0 %v95_v51 }
  0x3e   :  { %311 = vxpose.xlu0.b32.cont [15/16] %v295_v54, 128 }
  0x40   :  { %641 = vmatmul.mubr.f32.gmra.mrb[14].mxu0 %v96_v52 }
  0x42   :  { %312 = vxpose.xlu0.b32.end [16/16] %v296_v55, 128 }
  0x86   :  { %v313_v56 = vpop.trf.xlu0 }
  0x87   :  { %675 = vmatprep.mubr.f32.mxu1 %v313_v56 }
  0x8a   :  { %v933_v57 = vpop.trf.xlu0 }
  0x8e   :  { %v935_v58 = vpop.trf.xlu0 }
  0x92   :  { %v937_v59 = vpop.trf.xlu0 }
  0x96   :  { %v939_v60 = vpop.trf.xlu0 }
  0x9a   :  { %v944_v2 = vpop.trf.xlu0 }
  0x9e   :  { %v319_v12 = vpop.trf.xlu0 }
  0xa2   :  { %v320_v19 = vpop.trf.xlu0 }
  0xa6   :  { %v321_v29 = vpop.trf.xlu0 }
  0xaa   :  { %v322_v36 = vpop.trf.xlu0 }
  0xae   :  { %v323_v43 = vpop.trf.xlu0 }
  0xb2   :  { %v324_v44 = vpop.trf.xlu0 }
  0xb6   :  { %v325_v45 = vpop.trf.xlu0 }
  0xba   :  { %v326_v46 = vpop.trf.xlu0 }
  0xbe   :  { %v327_v47 = vpop.trf.xlu0 }
  0xc2   :  { %v328_v48 = vpop.trf.xlu0 }
  0xf7   :  { %v621_v62 = vpop.f32.mrb[0].mxu0 }
  0xf8   :  { %v192_v63 = vadd.f32 %v621_v62, %v522_v61  ;;  %v186_v0 = vpop.f32.mrb[1].mxu0 }
  0xf9   :  { %v187_v1 = vadd.f32 %v522_v61, %v186_v0 }
  0xfb   :  { %v624_v3 = vpop.f32.mrb[2].mxu0  ;;  %v731_v4 = vpack.c.bf16 %v192_v63, %v187_v1 }
  0xfc   :  { %v202_v5 = vadd.f32 %v624_v3, %v522_v61  ;;  %v196_v6 = vpop.f32.mrb[3].mxu0 }
  0xfd   :  { %v197_v7 = vadd.f32 %v522_v61, %v196_v6  ;;  %732 = vmatprep.subr.bf16.mxu1 %v731_v4 }
  0xfe   :  { %734 = vmatpush3.bf16.msra.mxu1 %v731_v4 }
  0xff   :  { %v735_v8 = vpack.c.bf16 %v202_v5, %v197_v7  ;;  %v627_v9 = vpop.f32.mrb[4].mxu0 }
 0x100   :  { %v212_v10 = vadd.f32 %v627_v9, %v522_v61  ;;  %v206_v11 = vpop.f32.mrb[5].mxu0 }
 0x101   :  { %v207_v13 = vadd.f32 %v522_v61, %v206_v11  ;;  %736 = vmatprep.subr.bf16.mxu1 %v735_v8 }
 0x102   :  { %738 = vmatpush3.bf16.msra.mxu1 %v735_v8 }
 0x103   :  { %v739_v14 = vpack.c.bf16 %v212_v10, %v207_v13  ;;  %v630_v15 = vpop.f32.mrb[6].mxu0 }
 0x104   :  { %v222_v16 = vadd.f32 %v630_v15, %v522_v61  ;;  %v216_v17 = vpop.f32.mrb[7].mxu0 }
 0x105   :  { %v217_v18 = vadd.f32 %v522_v61, %v216_v17  ;;  %740 = vmatprep.subr.bf16.mxu1 %v739_v14 }
 0x106   :  { %742 = vmatpush3.bf16.msra.mxu1 %v739_v14 }
 0x107   :  { %v743_v20 = vpack.c.bf16 %v222_v16, %v217_v18  ;;  %v633_v21 = vpop.f32.mrb[8].mxu0 }
 0x108   :  { %v232_v22 = vadd.f32 %v633_v21, %v522_v61  ;;  %v226_v23 = vpop.f32.mrb[9].mxu0 }
 0x109   :  { %v227_v24 = vadd.f32 %v522_v61, %v226_v23  ;;  %744 = vmatprep.subr.bf16.mxu1 %v743_v20 }
 0x10a   :  { %746 = vmatpush3.bf16.msra.mxu1 %v743_v20 }
 0x10b   :  { %v747_v25 = vpack.c.bf16 %v232_v22, %v227_v24  ;;  %v636_v26 = vpop.f32.mrb[10].mxu0 }
 0x10c   :  { %v242_v27 = vadd.f32 %v636_v26, %v522_v61  ;;  %v236_v28 = vpop.f32.mrb[11].mxu0 }
 0x10d   :  { %v237_v30 = vadd.f32 %v522_v61, %v236_v28  ;;  %748 = vmatprep.subr.bf16.mxu1 %v747_v25 }
 0x10e   :  { %750 = vmatpush3.bf16.msra.mxu1 %v747_v25 }
 0x10f   :  { %v751_v31 = vpack.c.bf16 %v242_v27, %v237_v30  ;;  %v639_v32 = vpop.f32.mrb[12].mxu0 }
 0x110   :  { %v252_v33 = vadd.f32 %v639_v32, %v522_v61  ;;  %v246_v34 = vpop.f32.mrb[13].mxu0 }
 0x111   :  { %v247_v35 = vadd.f32 %v522_v61, %v246_v34  ;;  %752 = vmatprep.subr.bf16.mxu1 %v751_v31 }
 0x112   :  { %754 = vmatpush3.bf16.msra.mxu1 %v751_v31 }
 0x113   :  { %v755_v37 = vpack.c.bf16 %v252_v33, %v247_v35  ;;  %v642_v38 = vpop.f32.mrb[14].mxu0 }
 0x114   :  { %v262_v39 = vadd.f32 %v642_v38, %v522_v61  ;;  %v256_v40 = vpop.f32.mrb[15].mxu0 }
 0x115   :  { %v257_v41 = vadd.f32 %v522_v61, %v256_v40  ;;  %756 = vmatprep.subr.bf16.mxu1 %v755_v37 }
 0x116   :  { %758 = vmatpush3.bf16.msra.mxu1 %v755_v37 }
 0x117   :  { %v759_v42 = vpack.c.bf16 %v262_v39, %v257_v41 }
 0x119   :  { %760 = vmatprep.subr.bf16.mxu1 %v759_v42 }
 0x11a   :  { %762 = vmatpush3.bf16.msra.mxu1 %v759_v42 }
 0x11d   :  { %676 = vmatmul.mubr.f32.vlgmr.msra.gmra.mrb[0].mxu1 %v933_v57 }
 0x11e   :  { %678 = vmatprep.mubr.f32.mxu1 %v935_v58 }
 0x121   :  { %679 = vmatmul.mubr.f32.gmra.mrb[2].mxu1 %v937_v59 }
 0x122   :  { %681 = vmatprep.mubr.f32.mxu1 %v939_v60 }
 0x125   :  { %682 = vmatmul.mubr.f32.gmra.mrb[4].mxu1 %v944_v2 }
 0x126   :  { %684 = vmatprep.mubr.f32.mxu1 %v319_v12 }
 0x129   :  { %685 = vmatmul.mubr.f32.gmra.mrb[6].mxu1 %v320_v19 }
 0x12a   :  { %687 = vmatprep.mubr.f32.mxu1 %v321_v29 }
 0x12d   :  { %688 = vmatmul.mubr.f32.gmra.mrb[8].mxu1 %v322_v36 }
 0x12e   :  { %690 = vmatprep.mubr.f32.mxu1 %v323_v43 }
 0x131   :  { %691 = vmatmul.mubr.f32.gmra.mrb[10].mxu1 %v324_v44 }
 0x132   :  { %693 = vmatprep.mubr.f32.mxu1 %v325_v45 }
 0x135   :  { %694 = vmatmul.mubr.f32.gmra.mrb[12].mxu1 %v326_v46 }
 0x136   :  { %696 = vmatprep.mubr.f32.mxu1 %v327_v47 }
 0x139   :  { %697 = vmatmul.mubr.f32.gmra.mrb[14].mxu1 %v328_v48 }
 0x1f0   :  { %v677_v49 = vpop.f32.mrb[0].mxu1 }
 0x1f1   :  { %v395_v50 = vpop.f32.mrb[1].mxu1  ;;  %491 = vst [vmem:[%s1003_s4 + $0x8] sm:$0xff] %v677_v49 }
 0x1f2   :  { %490 = vst [vmem:[%s1003_s4] sm:$0xff] %v395_v50 }
 0x1f4   :  { %v680_v51 = vpop.f32.mrb[2].mxu1 }
 0x1f5   :  { %v405_v52 = vpop.f32.mrb[3].mxu1  ;;  %493 = vst [vmem:[%s1003_s4 + $0x18] sm:$0xff] %v680_v51 }
 0x1f6   :  { %492 = vst [vmem:[%s1003_s4 + $0x10] sm:$0xff] %v405_v52 }
 0x1f8   :  { %v683_v53 = vpop.f32.mrb[4].mxu1 }
 0x1f9   :  { %v415_v54 = vpop.f32.mrb[5].mxu1  ;;  %495 = vst [vmem:[%s1003_s4 + $0x28] sm:$0xff] %v683_v53 }
 0x1fa   :  { %494 = vst [vmem:[%s1003_s4 + $0x20] sm:$0xff] %v415_v54 }
 0x1fc   :  { %v686_v55 = vpop.f32.mrb[6].mxu1 }
 0x1fd   :  { %v425_v56 = vpop.f32.mrb[7].mxu1  ;;  %497 = vst [vmem:[%s1003_s4 + $0x38] sm:$0xff] %v686_v55 }
 0x1fe   :  { %496 = vst [vmem:[%s1003_s4 + $0x30] sm:$0xff] %v425_v56 }
 0x200   :  { %v689_v57 = vpop.f32.mrb[8].mxu1 }
 0x201   :  { %v435_v58 = vpop.f32.mrb[9].mxu1  ;;  %499 = vst [vmem:[%s1003_s4 + $0x48] sm:$0xff] %v689_v57 }
 0x202   :  { %498 = vst [vmem:[%s1003_s4 + $0x40] sm:$0xff] %v435_v58 }
 0x204   :  { %v692_v59 = vpop.f32.mrb[10].mxu1 }
 0x205   :  { %v445_v60 = vpop.f32.mrb[11].mxu1  ;;  %501 = vst [vmem:[%s1003_s4 + $0x58] sm:$0xff] %v692_v59 }
 0x206   :  { %500 = vst [vmem:[%s1003_s4 + $0x50] sm:$0xff] %v445_v60 }
 0x208   :  { %v695_v61 = vpop.f32.mrb[12].mxu1 }
 0x209   :  { %v455_v62 = vpop.f32.mrb[13].mxu1  ;;  %503 = vst [vmem:[%s1003_s4 + $0x68] sm:$0xff] %v695_v61 }
 0x20a   :  { %502 = vst [vmem:[%s1003_s4 + $0x60] sm:$0xff] %v455_v62 }
 0x20c   :  { %v698_v63 = vpop.f32.mrb[14].mxu1 }
 0x20d   :  { %v465_v0 = vpop.f32.mrb[15].mxu1  ;;  %505 = vst [vmem:[%s1003_s4 + $0x78] sm:$0xff] %v698_v63 }
 0x20e   :  { %504 = vst [vmem:[%s1003_s4 + $0x70] sm:$0xff] %v465_v0 }

// kernel: graphite_ae_forward.13
= control target key start
LH: loop header
LB: loop body
LE: loop exit
PB: predicated region body
PF: predicated region fallthrough
CT: control target
= control target key end

     0   :  { %s1518_s1 = inlined_call_operand.vmem [shape: f32[128,128], index: 1, kind: input, shape index: {}]   ;;  %s1519_s0 = inlined_call_operand.vmem [shape: f32[128,128], index: 0, kind: input, shape index: {}]   ;;  %s1520_s6 = inlined_call_operand.vmem [shape: f32[128,128], index: 6, kind: input, shape index: {}]   ;;  %s1521_s4 = inlined_call_operand.vmem [shape: f32[128,128], index: 4, kind: input, shape index: {}]   ;;  %s1522_s3 = inlined_call_operand.vmem [shape: f32[128,128], index: 3, kind: input, shape index: {}]   ;;  %s1523_s2 = inlined_call_operand.vmem [shape: f32[1,128], index: 2, kind: input, shape index: {}]   ;;  %s1524_s5 = inlined_call_operand.vmem [shape: f32[1,128], index: 5, kind: input, shape index: {}]   ;;  %s1525_s7 = inlined_call_operand.vmem [shape: f32[128,256], index: 7, kind: output, shape index: {}]  }
   0x1   :  { %v144_v0 = vld [vmem:[%s1518_s1] sm:$0xff]  ;;  %v145_v1 = vld [vmem:[%s1518_s1 + $0x8] sm:$0xff]  ;;  %v146_v2 = vld [vmem:[%s1518_s1 + $0x10] sm:$0xff] }
   0x2   :  { %v1001_v3 = vpack.c.bf16 %v145_v1, %v144_v0  ;;  %v147_v4 = vld [vmem:[%s1518_s1 + $0x18] sm:$0xff]  ;;  %v148_v6 = vld [vmem:[%s1518_s1 + $0x20] sm:$0xff]  ;;  %v149_v7 = vld [vmem:[%s1518_s1 + $0x28] sm:$0xff] }
   0x3   :  { %v1005_v5 = vpack.c.bf16 %v147_v4, %v146_v2  ;;  %v1009_v8 = vpack.c.bf16 %v149_v7, %v148_v6  ;;  %v128_v9 = vld [vmem:[%s1519_s0] sm:$0xff]  ;;  %v150_v10 = vld [vmem:[%s1518_s1 + $0x30] sm:$0xff]  ;;  %v151_v11 = vld [vmem:[%s1518_s1 + $0x38] sm:$0xff] }
   0x4   :  { %1002 = vmatprep.subr.bf16.mxu1 %v1001_v3  ;;  %921 = vmatprep.mubr.f32.mxu1 %v128_v9  ;;  %v1013_v12 = vpack.c.bf16 %v151_v11, %v150_v10  ;;  %v152_v13 = vld [vmem:[%s1518_s1 + $0x40] sm:$0xff]  ;;  %v153_v14 = vld [vmem:[%s1518_s1 + $0x48] sm:$0xff]  ;;  %v154_v16 = vld [vmem:[%s1518_s1 + $0x50] sm:$0xff] }
   0x5   :  { %1004 = vmatpush3.bf16.msra.mxu1 %v1001_v3  ;;  %v1017_v15 = vpack.c.bf16 %v153_v14, %v152_v13  ;;  %v155_v17 = vld [vmem:[%s1518_s1 + $0x58] sm:$0xff]  ;;  %v156_v19 = vld [vmem:[%s1518_s1 + $0x60] sm:$0xff]  ;;  %v157_v20 = vld [vmem:[%s1518_s1 + $0x68] sm:$0xff] }
   0x6   :  { %1006 = vmatprep.subr.bf16.mxu1 %v1005_v5  ;;  %v1021_v18 = vpack.c.bf16 %v155_v17, %v154_v16  ;;  %v1025_v21 = vpack.c.bf16 %v157_v20, %v156_v19  ;;  %v528_v22 = vld [vmem:[%s1520_s6] sm:$0xff]  ;;  %v158_v23 = vld [vmem:[%s1518_s1 + $0x70] sm:$0xff]  ;;  %v159_v24 = vld [vmem:[%s1518_s1 + $0x78] sm:$0xff] }
   0x7   :  { %544 = vxpose.xlu0.b32.start [1/16] %v528_v22, 128  ;;  %v529_v25 = vld [vmem:[%s1520_s6 + $0x8] sm:$0xff]  ;;  %v1029_v26 = vpack.c.bf16 %v159_v24, %v158_v23  ;;  %v328_v27 = vld [vmem:[%s1521_s4] sm:$0xff]  ;;  %v530_v29 = vld [vmem:[%s1520_s6 + $0x10] sm:$0xff] }
   0x8   :  { %v329_v28 = vld [vmem:[%s1521_s4 + $0x8] sm:$0xff]  ;;  %v330_v31 = vld [vmem:[%s1521_s4 + $0x10] sm:$0xff]  ;;  %v331_v32 = vld [vmem:[%s1521_s4 + $0x18] sm:$0xff] }
   0x9   :  { %1008 = vmatpush3.bf16.msra.mxu1 %v1005_v5  ;;  %v1033_v30 = vpack.c.bf16 %v329_v28, %v328_v27  ;;  %v531_v33 = vld [vmem:[%s1520_s6 + $0x18] sm:$0xff]  ;;  %v129_v34 = vld [vmem:[%s1519_s0 + $0x8] sm:$0xff]  ;;  %v130_v35 = vld [vmem:[%s1519_s0 + $0x10] sm:$0xff]  ;;  %v1037_v36 = vpack.c.bf16 %v331_v32, %v330_v31  ;;  %v1098_v32 = vmov 0.0  }
   0xa   :  { %1010 = vmatprep.subr.bf16.mxu1 %v1009_v8  ;;  %v332_v37 = vld [vmem:[%s1521_s4 + $0x20] sm:$0xff]  ;;  %v333_v38 = vld [vmem:[%s1521_s4 + $0x28] sm:$0xff]  ;;  %v131_v40 = vld [vmem:[%s1519_s0 + $0x18] sm:$0xff]  ;;  %640 = vmatprep.mubr.f32.mxu0 %v1098_v32 }
   0xb   :  { %545 = vxpose.xlu0.b32.cont [2/16] %v529_v25, 128  ;;  %v532_v39 = vld [vmem:[%s1520_s6 + $0x20] sm:$0xff]  ;;  %v1041_v42 = vpack.c.bf16 %v333_v38, %v332_v37  ;;  %v334_v43 = vld [vmem:[%s1521_s4 + $0x30] sm:$0xff]  ;;  %v335_v44 = vld [vmem:[%s1521_s4 + $0x38] sm:$0xff] }
   0xc   :  { %v132_v41 = vld [vmem:[%s1519_s0 + $0x20] sm:$0xff]  ;;  %v533_v45 = vld [vmem:[%s1520_s6 + $0x28] sm:$0xff]  ;;  %v134_v47 = vld [vmem:[%s1519_s0 + $0x30] sm:$0xff]  ;;  %v1045_v48 = vpack.c.bf16 %v335_v44, %v334_v43 }
   0xd   :  { %1012 = vmatpush3.bf16.msra.mxu1 %v1009_v8  ;;  %v133_v46 = vld [vmem:[%s1519_s0 + $0x28] sm:$0xff]  ;;  %v336_v49 = vld [vmem:[%s1521_s4 + $0x40] sm:$0xff]  ;;  %v534_v51 = vld [vmem:[%s1520_s6 + $0x30] sm:$0xff] }
   0xe   :  { %1014 = vmatprep.subr.bf16.mxu1 %v1013_v12  ;;  %v337_v50 = vld [vmem:[%s1521_s4 + $0x48] sm:$0xff]  ;;  %v135_v52 = vld [vmem:[%s1519_s0 + $0x38] sm:$0xff]  ;;  %v136_v53 = vld [vmem:[%s1519_s0 + $0x40] sm:$0xff] }
   0xf   :  { %546 = vxpose.xlu0.b32.cont [3/16] %v530_v29, 128  ;;  %v1049_v54 = vpack.c.bf16 %v337_v50, %v336_v49  ;;  %v338_v55 = vld [vmem:[%s1521_s4 + $0x50] sm:$0xff]  ;;  %v339_v56 = vld [vmem:[%s1521_s4 + $0x58] sm:$0xff]  ;;  %v137_v58 = vld [vmem:[%s1519_s0 + $0x48] sm:$0xff] }
  0x10   :  { %v535_v57 = vld [vmem:[%s1520_s6 + $0x38] sm:$0xff]  ;;  %v138_v59 = vld [vmem:[%s1519_s0 + $0x50] sm:$0xff]  ;;  %v1053_v60 = vpack.c.bf16 %v339_v56, %v338_v55  ;;  %v340_v61 = vld [vmem:[%s1521_s4 + $0x60] sm:$0xff] }
  0x11   :  { %1016 = vmatpush3.bf16.msra.mxu1 %v1013_v12  ;;  %v341_v62 = vld [vmem:[%s1521_s4 + $0x68] sm:$0xff]  ;;  %v536_v63 = vld [vmem:[%s1520_s6 + $0x40] sm:$0xff]  ;;  %v139_v0 = vld [vmem:[%s1519_s0 + $0x58] sm:$0xff] }
  0x12   :  { %1018 = vmatprep.subr.bf16.mxu1 %v1017_v15  ;;  %v140_v1 = vld [vmem:[%s1519_s0 + $0x60] sm:$0xff]  ;;  %v1057_v2 = vpack.c.bf16 %v341_v62, %v340_v61  ;;  %v342_v3 = vld [vmem:[%s1521_s4 + $0x70] sm:$0xff]  ;;  %v343_v4 = vld [vmem:[%s1521_s4 + $0x78] sm:$0xff] }
  0x13   :  { %547 = vxpose.xlu0.b32.cont [4/16] %v531_v33, 128  ;;  %v537_v5 = vld [vmem:[%s1520_s6 + $0x48] sm:$0xff]  ;;  %v142_v7 = vld [vmem:[%s1519_s0 + $0x70] sm:$0xff]  ;;  %v1061_v8 = vpack.c.bf16 %v343_v4, %v342_v3  ;;  %v143_v10 = vld [vmem:[%s1519_s0 + $0x78] sm:$0xff] }
  0x14   :  { %v141_v6 = vld [vmem:[%s1519_s0 + $0x68] sm:$0xff]  ;;  %v538_v9 = vld [vmem:[%s1520_s6 + $0x50] sm:$0xff]  ;;  %v312_v11 = vld [vmem:[%s1522_s3] sm:$0xff] }
  0x15   :  { %1020 = vmatpush3.bf16.msra.mxu1 %v1017_v15  ;;  %v539_v12 = vld [vmem:[%s1520_s6 + $0x58] sm:$0xff]  ;;  %v313_v13 = vld [vmem:[%s1522_s3 + $0x8] sm:$0xff]  ;;  %v314_v14 = vld [vmem:[%s1522_s3 + $0x10] sm:$0xff] }
  0x16   :  { %1022 = vmatprep.subr.bf16.mxu1 %v1021_v18  ;;  %v540_v15 = vld [vmem:[%s1520_s6 + $0x60] sm:$0xff]  ;;  %v315_v16 = vld [vmem:[%s1522_s3 + $0x18] sm:$0xff]  ;;  %v317_v19 = vld [vmem:[%s1522_s3 + $0x28] sm:$0xff] }
  0x17   :  { %548 = vxpose.xlu0.b32.cont [5/16] %v532_v39, 128  ;;  %v316_v17 = vld [vmem:[%s1522_s3 + $0x20] sm:$0xff]  ;;  %v318_v20 = vld [vmem:[%s1522_s3 + $0x30] sm:$0xff]  ;;  %v319_v22 = vld [vmem:[%s1522_s3 + $0x38] sm:$0xff] }
  0x18   :  { %v320_v23 = vld [vmem:[%s1522_s3 + $0x40] sm:$0xff]  ;;  %v321_v24 = vld [vmem:[%s1522_s3 + $0x48] sm:$0xff]  ;;  %v322_v25 = vld [vmem:[%s1522_s3 + $0x50] sm:$0xff] }
  0x19   :  { %1024 = vmatpush3.bf16.msra.mxu1 %v1021_v18  ;;  %v541_v18 = vld [vmem:[%s1520_s6 + $0x68] sm:$0xff]  ;;  %v324_v27 = vld [vmem:[%s1522_s3 + $0x60] sm:$0xff]  ;;  %v326_v29 = vld [vmem:[%s1522_s3 + $0x70] sm:$0xff] }
  0x1a   :  { %1026 = vmatprep.subr.bf16.mxu1 %v1025_v21  ;;  %v325_v28 = vld [vmem:[%s1522_s3 + $0x68] sm:$0xff]  ;;  %v543_v31 = vld [vmem:[%s1520_s6 + $0x78] sm:$0xff]  ;;  %v823_v33 = vld [vmem:[%s1523_s2] ss:$0 sm:$0xff] }
  0x1b   :  { %549 = vxpose.xlu0.b32.cont [6/16] %v533_v45, 128 }
  0x1d   :  { %1028 = vmatpush3.bf16.msra.mxu1 %v1025_v21  ;;  %v542_v21 = vld [vmem:[%s1520_s6 + $0x70] sm:$0xff] }
  0x1e   :  { %1030 = vmatprep.subr.bf16.mxu1 %v1029_v26 }
  0x1f   :  { %550 = vxpose.xlu0.b32.cont [7/16] %v534_v51, 128 }
  0x21   :  { %1032 = vmatpush3.bf16.msra.mxu1 %v1029_v26  ;;  %v323_v26 = vld [vmem:[%s1522_s3 + $0x58] sm:$0xff] }
  0x22   :  { %1034 = vmatprep.subr.bf16.mxu1 %v1033_v30 }
  0x23   :  { %551 = vxpose.xlu0.b32.cont [8/16] %v535_v57, 128 }
  0x24   :  { %922 = vmatmul.mubr.f32.vlgmr.msra.gmra.mrb[0].mxu1 %v129_v34 }
  0x25   :  { %1036 = vmatpush3.bf16.msra.mxu1 %v1033_v30  ;;  %924 = vmatprep.mubr.f32.mxu1 %v130_v35  ;;  %v327_v30 = vld [vmem:[%s1522_s3 + $0x78] sm:$0xff] }
  0x26   :  { %1038 = vmatprep.subr.bf16.mxu1 %v1037_v36 }
  0x27   :  { %552 = vxpose.xlu0.b32.cont [9/16] %v536_v63, 128 }
  0x28   :  { %925 = vmatmul.mubr.f32.gmra.mrb[2].mxu1 %v131_v40 }
  0x29   :  { %1040 = vmatpush3.bf16.msra.mxu1 %v1037_v36  ;;  %927 = vmatprep.mubr.f32.mxu1 %v132_v41 }
  0x2a   :  { %1042 = vmatprep.subr.bf16.mxu1 %v1041_v42 }
  0x2b   :  { %553 = vxpose.xlu0.b32.cont [10/16] %v537_v5, 128 }
  0x2c   :  { %928 = vmatmul.mubr.f32.gmra.mrb[4].mxu1 %v133_v46 }
  0x2d   :  { %1044 = vmatpush3.bf16.msra.mxu1 %v1041_v42  ;;  %930 = vmatprep.mubr.f32.mxu1 %v134_v47 }
  0x2e   :  { %1046 = vmatprep.subr.bf16.mxu1 %v1045_v48 }
  0x2f   :  { %554 = vxpose.xlu0.b32.cont [11/16] %v538_v9, 128  ;;  %v824_v9 = vld [vmem:[%s1524_s5] ss:$0 sm:$0xff] }
  0x30   :  { %931 = vmatmul.mubr.f32.gmra.mrb[6].mxu1 %v135_v52 }
  0x31   :  { %1048 = vmatpush3.bf16.msra.mxu1 %v1045_v48  ;;  %933 = vmatprep.mubr.f32.mxu1 %v136_v53 }
  0x32   :  { %1050 = vmatprep.subr.bf16.mxu1 %v1049_v54 }
  0x33   :  { %555 = vxpose.xlu0.b32.cont [12/16] %v539_v12, 128 }
  0x34   :  { %934 = vmatmul.mubr.f32.gmra.mrb[8].mxu1 %v137_v58 }
  0x35   :  { %1052 = vmatpush3.bf16.msra.mxu1 %v1049_v54  ;;  %936 = vmatprep.mubr.f32.mxu1 %v138_v59 }
  0x36   :  { %1054 = vmatprep.subr.bf16.mxu1 %v1053_v60 }
  0x37   :  { %556 = vxpose.xlu0.b32.cont [13/16] %v540_v15, 128 }
  0x38   :  { %937 = vmatmul.mubr.f32.gmra.mrb[10].mxu1 %v139_v0 }
  0x39   :  { %1056 = vmatpush3.bf16.msra.mxu1 %v1053_v60  ;;  %939 = vmatprep.mubr.f32.mxu1 %v140_v1 }
  0x3a   :  { %1058 = vmatprep.subr.bf16.mxu1 %v1057_v2 }
  0x3b   :  { %557 = vxpose.xlu0.b32.cont [14/16] %v541_v18, 128 }
  0x3c   :  { %940 = vmatmul.mubr.f32.gmra.mrb[12].mxu1 %v141_v6 }
  0x3d   :  { %1060 = vmatpush3.bf16.msra.mxu1 %v1057_v2  ;;  %942 = vmatprep.mubr.f32.mxu1 %v142_v7 }
  0x3e   :  { %1062 = vmatprep.subr.bf16.mxu1 %v1061_v8 }
  0x3f   :  { %558 = vxpose.xlu0.b32.cont [15/16] %v542_v21, 128 }
  0x40   :  { %943 = vmatmul.mubr.f32.gmra.mrb[14].mxu1 %v143_v10 }
  0x41   :  { %1064 = vmatpush3.bf16.msra.mxu1 %v1061_v8  ;;  %977 = vmatprep.mubr.f32.mxu1 %v312_v11 }
  0x43   :  { %559 = vxpose.xlu0.b32.end [16/16] %v543_v31, 128 }
  0x44   :  { %978 = vmatmul.mubr.f32.vlgmr.msra.gmra.mrb[16].mxu1 %v313_v13 }
  0x45   :  { %980 = vmatprep.mubr.f32.mxu1 %v314_v14 }
  0x48   :  { %981 = vmatmul.mubr.f32.gmra.mrb[18].mxu1 %v315_v16 }
  0x49   :  { %983 = vmatprep.mubr.f32.mxu1 %v316_v17 }
  0x4c   :  { %984 = vmatmul.mubr.f32.gmra.mrb[20].mxu1 %v317_v19 }
  0x4d   :  { %986 = vmatprep.mubr.f32.mxu1 %v318_v20 }
  0x50   :  { %987 = vmatmul.mubr.f32.gmra.mrb[22].mxu1 %v319_v22 }
  0x51   :  { %989 = vmatprep.mubr.f32.mxu1 %v320_v23 }
  0x54   :  { %990 = vmatmul.mubr.f32.gmra.mrb[24].mxu1 %v321_v24 }
  0x55   :  { %992 = vmatprep.mubr.f32.mxu1 %v322_v25 }
  0x58   :  { %993 = vmatmul.mubr.f32.gmra.mrb[26].mxu1 %v323_v26 }
  0x59   :  { %995 = vmatprep.mubr.f32.mxu1 %v324_v27 }
  0x5c   :  { %996 = vmatmul.mubr.f32.gmra.mrb[28].mxu1 %v325_v28 }
  0x5d   :  { %998 = vmatprep.mubr.f32.mxu1 %v326_v29 }
  0x60   :  { %999 = vmatmul.mubr.f32.gmra.mrb[30].mxu1 %v327_v30 }
  0x87   :  { %v560_v19 = vpop.trf.xlu0 }
  0x8b   :  { %v561_v26 = vpop.trf.xlu0 }
  0xf7   :  { %v923_v34 = vpop.f32.mrb[0].mxu1 }
  0xf8   :  { %v239_v35 = vadd.f32 %v923_v34, %v823_v33  ;;  %v233_v36 = vpop.f32.mrb[1].mxu1 }
  0xf9   :  { %v234_v37 = vadd.f32 %v823_v33, %v233_v36 }
  0xfb   :  { %v926_v38 = vpop.f32.mrb[2].mxu1  ;;  %v1067_v39 = vpack.c.bf16 %v239_v35, %v234_v37  ;;  %v562_v37 = vpop.trf.xlu0 }
  0xfc   :  { %v249_v40 = vadd.f32 %v926_v38, %v823_v33  ;;  %v243_v41 = vpop.f32.mrb[3].mxu1 }
  0xfd   :  { %v244_v42 = vadd.f32 %v823_v33, %v243_v41 }
  0xff   :  { %v1071_v43 = vpack.c.bf16 %v249_v40, %v244_v42  ;;  %v929_v44 = vpop.f32.mrb[4].mxu1 }
 0x100   :  { %v259_v45 = vadd.f32 %v929_v44, %v823_v33  ;;  %v253_v46 = vpop.f32.mrb[5].mxu1  ;;  %v563_v44 = vpop.trf.xlu0 }
 0x101   :  { %v254_v47 = vadd.f32 %v823_v33, %v253_v46 }
 0x103   :  { %v1075_v48 = vpack.c.bf16 %v259_v45, %v254_v47  ;;  %v932_v49 = vpop.f32.mrb[6].mxu1 }
 0x104   :  { %v269_v50 = vadd.f32 %v932_v49, %v823_v33  ;;  %v263_v51 = vpop.f32.mrb[7].mxu1 }
 0x105   :  { %v264_v52 = vadd.f32 %v823_v33, %v263_v51 }
 0x107   :  { %v1079_v53 = vpack.c.bf16 %v269_v50, %v264_v52  ;;  %v935_v54 = vpop.f32.mrb[8].mxu1 }
 0x108   :  { %v279_v55 = vadd.f32 %v935_v54, %v823_v33  ;;  %v273_v56 = vpop.f32.mrb[9].mxu1 }
 0x109   :  { %v274_v57 = vadd.f32 %v823_v33, %v273_v56 }
 0x10b   :  { %v1083_v58 = vpack.c.bf16 %v279_v55, %v274_v57  ;;  %v938_v59 = vpop.f32.mrb[10].mxu1 }
 0x10c   :  { %v1383_v60 = vadd.f32 %v938_v59, %v823_v33  ;;  %v283_v61 = vpop.f32.mrb[11].mxu1 }
 0x10d   :  { %v1385_v62 = vadd.f32 %v823_v33, %v283_v61 }
 0x10f   :  { %v1087_v63 = vpack.c.bf16 %v1383_v60, %v1385_v62  ;;  %v941_v0 = vpop.f32.mrb[12].mxu1 }
 0x110   :  { %v1389_v1 = vadd.f32 %v941_v0, %v823_v33  ;;  %v293_v2 = vpop.f32.mrb[13].mxu1 }
 0x111   :  { %v1391_v3 = vadd.f32 %v823_v33, %v293_v2 }
 0x113   :  { %v1091_v4 = vpack.c.bf16 %v1389_v1, %v1391_v3  ;;  %v944_v5 = vpop.f32.mrb[14].mxu1 }
 0x114   :  { %v1395_v6 = vadd.f32 %v944_v5, %v823_v33  ;;  %v303_v7 = vpop.f32.mrb[15].mxu1 }
 0x115   :  { %v1397_v8 = vadd.f32 %v823_v33, %v303_v7 }
 0x117   :  { %v1095_v10 = vpack.c.bf16 %v1395_v6, %v1397_v8  ;;  %v979_v11 = vpop.f32.mrb[16].mxu1 }
 0x118   :  { %v423_v12 = vadd.f32 %v979_v11, %v824_v9  ;;  %v417_v13 = vpop.f32.mrb[17].mxu1 }
 0x119   :  { %v418_v14 = vadd.f32 %v824_v9, %v417_v13 }
 0x11b   :  { %v982_v15 = vpop.f32.mrb[18].mxu1  ;;  %v1065_v16 = vpack.c.bf16 %v423_v12, %v418_v14 }
 0x11c   :  { %v433_v17 = vadd.f32 %v982_v15, %v824_v9  ;;  %v427_v18 = vpop.f32.mrb[19].mxu1 }
 0x11d   :  { %v428_v20 = vadd.f32 %v824_v9, %v427_v18  ;;  %1066 = vmatprep.subr.bf16.mxu0 %v1065_v16 }
 0x11e   :  { %1068 = vmatpush1.bf16.msra.mxu0 %v1067_v39 }
 0x11f   :  { %v1069_v21 = vpack.c.bf16 %v433_v17, %v428_v20  ;;  %v985_v22 = vpop.f32.mrb[20].mxu1 }
 0x120   :  { %v443_v23 = vadd.f32 %v985_v22, %v824_v9  ;;  %v437_v24 = vpop.f32.mrb[21].mxu1 }
 0x121   :  { %v438_v25 = vadd.f32 %v824_v9, %v437_v24  ;;  %1070 = vmatprep.subr.bf16.mxu0 %v1069_v21 }
 0x122   :  { %1072 = vmatpush1.bf16.msra.mxu0 %v1071_v43 }
 0x123   :  { %v1073_v27 = vpack.c.bf16 %v443_v23, %v438_v25  ;;  %v988_v28 = vpop.f32.mrb[22].mxu1 }
 0x124   :  { %v453_v29 = vadd.f32 %v988_v28, %v824_v9  ;;  %v447_v30 = vpop.f32.mrb[23].mxu1 }
 0x125   :  { %v448_v31 = vadd.f32 %v824_v9, %v447_v30  ;;  %1074 = vmatprep.subr.bf16.mxu0 %v1073_v27 }
 0x126   :  { %1076 = vmatpush1.bf16.msra.mxu0 %v1075_v48 }
 0x127   :  { %v1077_v33 = vpack.c.bf16 %v453_v29, %v448_v31  ;;  %v991_v34 = vpop.f32.mrb[24].mxu1 }
 0x128   :  { %v463_v35 = vadd.f32 %v991_v34, %v824_v9  ;;  %v457_v36 = vpop.f32.mrb[25].mxu1 }
 0x129   :  { %v458_v38 = vadd.f32 %v824_v9, %v457_v36  ;;  %1078 = vmatprep.subr.bf16.mxu0 %v1077_v33 }
 0x12a   :  { %1080 = vmatpush1.bf16.msra.mxu0 %v1079_v53  ;;  %v564_v53 = vpop.trf.xlu0 }
 0x12b   :  { %v1081_v39 = vpack.c.bf16 %v463_v35, %v458_v38  ;;  %v994_v40 = vpop.f32.mrb[26].mxu1 }
 0x12c   :  { %v473_v41 = vadd.f32 %v994_v40, %v824_v9  ;;  %v467_v42 = vpop.f32.mrb[27].mxu1 }
 0x12d   :  { %v468_v43 = vadd.f32 %v824_v9, %v467_v42  ;;  %1082 = vmatprep.subr.bf16.mxu0 %v1081_v39 }
 0x12e   :  { %1084 = vmatpush1.bf16.msra.mxu0 %v1083_v58  ;;  %v565_v57 = vpop.trf.xlu0 }
 0x12f   :  { %v1085_v45 = vpack.c.bf16 %v473_v41, %v468_v43  ;;  %v997_v46 = vpop.f32.mrb[28].mxu1 }
 0x130   :  { %v483_v47 = vadd.f32 %v997_v46, %v824_v9  ;;  %v477_v48 = vpop.f32.mrb[29].mxu1 }
 0x131   :  { %v478_v49 = vadd.f32 %v824_v9, %v477_v48  ;;  %1086 = vmatprep.subr.bf16.mxu0 %v1085_v45 }
 0x132   :  { %1088 = vmatpush1.bf16.msra.mxu0 %v1087_v63  ;;  %v566_v58 = vpop.trf.xlu0 }
 0x133   :  { %v1089_v50 = vpack.c.bf16 %v483_v47, %v478_v49  ;;  %v1000_v51 = vpop.f32.mrb[30].mxu1 }
 0x134   :  { %v493_v52 = vadd.f32 %v1000_v51, %v824_v9  ;;  %v487_v54 = vpop.f32.mrb[31].mxu1 }
 0x135   :  { %v488_v55 = vadd.f32 %v824_v9, %v487_v54  ;;  %1090 = vmatprep.subr.bf16.mxu0 %v1089_v50 }
 0x136   :  { %1092 = vmatpush1.bf16.msra.mxu0 %v1091_v4  ;;  %v567_v59 = vpop.trf.xlu0 }
 0x137   :  { %v1093_v56 = vpack.c.bf16 %v493_v52, %v488_v55 }
 0x139   :  { %1094 = vmatprep.subr.bf16.mxu0 %v1093_v56 }
 0x13a   :  { %1096 = vmatpush1.bf16.msra.mxu0 %v1095_v10  ;;  %v568_v60 = vpop.trf.xlu0 }
 0x13d   :  { %641 = vmatmul.mubr.f32.vlgmr.msra.gmra.mrb[0].mxu0 %v560_v19 }
 0x13e   :  { %646 = vmatprep.mubr.f32.mxu0 %v1098_v32  ;;  %v569_v61 = vpop.trf.xlu0 }
 0x141   :  { %647 = vmatmul.mubr.f32.gmra.mrb[2].mxu0 %v561_v26 }
 0x142   :  { %652 = vmatprep.mubr.f32.mxu0 %v1098_v32  ;;  %v570_v62 = vpop.trf.xlu0 }
 0x145   :  { %653 = vmatmul.mubr.f32.gmra.mrb[4].mxu0 %v562_v37 }
 0x146   :  { %658 = vmatprep.mubr.f32.mxu0 %v1098_v32  ;;  %v571_v63 = vpop.trf.xlu0 }
 0x149   :  { %659 = vmatmul.mubr.f32.gmra.mrb[6].mxu0 %v563_v44 }
 0x14a   :  { %664 = vmatprep.mubr.f32.mxu0 %v1098_v32  ;;  %v572_v0 = vpop.trf.xlu0 }
 0x14d   :  { %665 = vmatmul.mubr.f32.gmra.mrb[8].mxu0 %v564_v53 }
 0x14e   :  { %670 = vmatprep.mubr.f32.mxu0 %v1098_v32  ;;  %v573_v1 = vpop.trf.xlu0 }
 0x151   :  { %671 = vmatmul.mubr.f32.gmra.mrb[10].mxu0 %v565_v57 }
 0x152   :  { %676 = vmatprep.mubr.f32.mxu0 %v1098_v32  ;;  %v574_v2 = vpop.trf.xlu0 }
 0x155   :  { %677 = vmatmul.mubr.f32.gmra.mrb[12].mxu0 %v566_v58 }
 0x156   :  { %682 = vmatprep.mubr.f32.mxu0 %v1098_v32  ;;  %v575_v3 = vpop.trf.xlu0 }
 0x159   :  { %683 = vmatmul.mubr.f32.gmra.mrb[14].mxu0 %v567_v59 }
 0x15a   :  { %688 = vmatprep.mubr.f32.mxu0 %v1098_v32 }
 0x15d   :  { %689 = vmatmul.mubr.f32.gmra.mrb[16].mxu0 %v568_v60 }
 0x15e   :  { %694 = vmatprep.mubr.f32.mxu0 %v1098_v32 }
 0x161   :  { %695 = vmatmul.mubr.f32.gmra.mrb[18].mxu0 %v569_v61 }
 0x162   :  { %700 = vmatprep.mubr.f32.mxu0 %v1098_v32 }
 0x165   :  { %701 = vmatmul.mubr.f32.gmra.mrb[20].mxu0 %v570_v62 }
 0x166   :  { %706 = vmatprep.mubr.f32.mxu0 %v1098_v32 }
 0x169   :  { %707 = vmatmul.mubr.f32.gmra.mrb[22].mxu0 %v571_v63 }
 0x16a   :  { %712 = vmatprep.mubr.f32.mxu0 %v1098_v32 }
 0x16d   :  { %713 = vmatmul.mubr.f32.gmra.mrb[24].mxu0 %v572_v0 }
 0x16e   :  { %718 = vmatprep.mubr.f32.mxu0 %v1098_v32 }
 0x171   :  { %719 = vmatmul.mubr.f32.gmra.mrb[26].mxu0 %v573_v1 }
 0x172   :  { %724 = vmatprep.mubr.f32.mxu0 %v1098_v32 }
 0x175   :  { %725 = vmatmul.mubr.f32.gmra.mrb[28].mxu0 %v574_v2 }
 0x176   :  { %730 = vmatprep.mubr.f32.mxu0 %v1098_v32 }
 0x179   :  { %731 = vmatmul.mubr.f32.gmra.mrb[30].mxu0 %v575_v3 }
 0x210   :  { %v642_v4 = vpop.f32.mrb[0].mxu0 }
 0x211   :  { %v644_v5 = vpop.f32.mrb[1].mxu0  ;;  %769 = vst [vmem:[%s1525_s7] sm:$0xff] %v642_v4 }
 0x212   :  { %770 = vst [vmem:[%s1525_s7 + $0x8] sm:$0xff] %v644_v5 }
 0x214   :  { %v648_v6 = vpop.f32.mrb[2].mxu0 }
 0x215   :  { %v650_v7 = vpop.f32.mrb[3].mxu0  ;;  %771 = vst [vmem:[%s1525_s7 + $0x10] sm:$0xff] %v648_v6 }
 0x216   :  { %772 = vst [vmem:[%s1525_s7 + $0x18] sm:$0xff] %v650_v7 }
 0x218   :  { %v654_v32 = vpop.f32.mrb[4].mxu0 }
 0x219   :  { %v656_v8 = vpop.f32.mrb[5].mxu0  ;;  %773 = vst [vmem:[%s1525_s7 + $0x20] sm:$0xff] %v654_v32 }
 0x21a   :  { %774 = vst [vmem:[%s1525_s7 + $0x28] sm:$0xff] %v656_v8 }
 0x21c   :  { %v660_v9 = vpop.f32.mrb[6].mxu0 }
 0x21d   :  { %v662_v10 = vpop.f32.mrb[7].mxu0  ;;  %775 = vst [vmem:[%s1525_s7 + $0x30] sm:$0xff] %v660_v9 }
 0x21e   :  { %776 = vst [vmem:[%s1525_s7 + $0x38] sm:$0xff] %v662_v10 }
 0x220   :  { %v666_v11 = vpop.f32.mrb[8].mxu0 }
 0x221   :  { %v668_v12 = vpop.f32.mrb[9].mxu0  ;;  %777 = vst [vmem:[%s1525_s7 + $0x40] sm:$0xff] %v666_v11 }
 0x222   :  { %778 = vst [vmem:[%s1525_s7 + $0x48] sm:$0xff] %v668_v12 }
 0x224   :  { %v672_v13 = vpop.f32.mrb[10].mxu0 }
 0x225   :  { %v674_v14 = vpop.f32.mrb[11].mxu0  ;;  %779 = vst [vmem:[%s1525_s7 + $0x50] sm:$0xff] %v672_v13 }
 0x226   :  { %780 = vst [vmem:[%s1525_s7 + $0x58] sm:$0xff] %v674_v14 }
 0x228   :  { %v678_v15 = vpop.f32.mrb[12].mxu0 }
 0x229   :  { %v680_v16 = vpop.f32.mrb[13].mxu0  ;;  %781 = vst [vmem:[%s1525_s7 + $0x60] sm:$0xff] %v678_v15 }
 0x22a   :  { %782 = vst [vmem:[%s1525_s7 + $0x68] sm:$0xff] %v680_v16 }
 0x22c   :  { %v684_v17 = vpop.f32.mrb[14].mxu0 }
 0x22d   :  { %v686_v18 = vpop.f32.mrb[15].mxu0  ;;  %783 = vst [vmem:[%s1525_s7 + $0x70] sm:$0xff] %v684_v17 }
 0x22e   :  { %784 = vst [vmem:[%s1525_s7 + $0x78] sm:$0xff] %v686_v18 }
 0x230   :  { %v690_v19 = vpop.f32.mrb[16].mxu0 }
 0x231   :  { %v692_v20 = vpop.f32.mrb[17].mxu0  ;;  %785 = vst [vmem:[%s1525_s7 + $0x80] sm:$0xff] %v690_v19 }
 0x232   :  { %786 = vst [vmem:[%s1525_s7 + $0x88] sm:$0xff] %v692_v20 }
 0x234   :  { %v696_v21 = vpop.f32.mrb[18].mxu0 }
 0x235   :  { %v698_v22 = vpop.f32.mrb[19].mxu0  ;;  %787 = vst [vmem:[%s1525_s7 + $0x90] sm:$0xff] %v696_v21 }
 0x236   :  { %788 = vst [vmem:[%s1525_s7 + $0x98] sm:$0xff] %v698_v22 }
 0x238   :  { %v702_v23 = vpop.f32.mrb[20].mxu0 }
 0x239   :  { %v704_v24 = vpop.f32.mrb[21].mxu0  ;;  %789 = vst [vmem:[%s1525_s7 + $0xa0] sm:$0xff] %v702_v23 }
 0x23a   :  { %790 = vst [vmem:[%s1525_s7 + $0xa8] sm:$0xff] %v704_v24 }
 0x23c   :  { %v708_v25 = vpop.f32.mrb[22].mxu0 }
 0x23d   :  { %v710_v26 = vpop.f32.mrb[23].mxu0  ;;  %791 = vst [vmem:[%s1525_s7 + $0xb0] sm:$0xff] %v708_v25 }
 0x23e   :  { %792 = vst [vmem:[%s1525_s7 + $0xb8] sm:$0xff] %v710_v26 }
 0x240   :  { %v714_v27 = vpop.f32.mrb[24].mxu0 }
 0x241   :  { %v716_v28 = vpop.f32.mrb[25].mxu0  ;;  %793 = vst [vmem:[%s1525_s7 + $0xc0] sm:$0xff] %v714_v27 }
 0x242   :  { %794 = vst [vmem:[%s1525_s7 + $0xc8] sm:$0xff] %v716_v28 }
 0x244   :  { %v720_v29 = vpop.f32.mrb[26].mxu0 }
 0x245   :  { %v722_v30 = vpop.f32.mrb[27].mxu0  ;;  %795 = vst [vmem:[%s1525_s7 + $0xd0] sm:$0xff] %v720_v29 }
 0x246   :  { %796 = vst [vmem:[%s1525_s7 + $0xd8] sm:$0xff] %v722_v30 }
 0x248   :  { %v726_v31 = vpop.f32.mrb[28].mxu0 }
 0x249   :  { %v728_v33 = vpop.f32.mrb[29].mxu0  ;;  %797 = vst [vmem:[%s1525_s7 + $0xe0] sm:$0xff] %v726_v31 }
 0x24a   :  { %798 = vst [vmem:[%s1525_s7 + $0xe8] sm:$0xff] %v728_v33 }
 0x24c   :  { %v732_v34 = vpop.f32.mrb[30].mxu0 }
 0x24d   :  { %v734_v35 = vpop.f32.mrb[31].mxu0  ;;  %799 = vst [vmem:[%s1525_s7 + $0xf0] sm:$0xff] %v732_v34 }
 0x24e   :  { %800 = vst [vmem:[%s1525_s7 + $0xf8] sm:$0xff] %v734_v35 }

// kernel: graphite_ae_forward.17
= control target key start
LH: loop header
LB: loop body
LE: loop exit
PB: predicated region body
PF: predicated region fallthrough
CT: control target
= control target key end

     0   :  { %s503_s1 = inlined_call_operand.vmem [shape: f32[128,128], index: 1, kind: input, shape index: {}, may-alias: {0,1}]   ;;  %s504_s0 = inlined_call_operand.vmem [shape: f32[128,128], index: 0, kind: input, shape index: {}, may-alias: {0,1}]   ;;  %s505_s2 = inlined_call_operand.vmem [shape: f32[128,128], index: 2, kind: output, shape index: {}]  }
   0x1   :  { %v27_v0 = vld [vmem:[%s503_s1] sm:$0xff]  ;;  %v28_v1 = vld [vmem:[%s503_s1 + $0x8] sm:$0xff]  ;;  %v29_v2 = vld [vmem:[%s503_s1 + $0x10] sm:$0xff] }
   0x2   :  { %v296_v3 = vpack.c.bf16 %v28_v1, %v27_v0  ;;  %v30_v4 = vld [vmem:[%s503_s1 + $0x18] sm:$0xff]  ;;  %v11_v6 = vld [vmem:[%s504_s0] sm:$0xff]  ;;  %v32_v9 = vld [vmem:[%s503_s1 + $0x28] sm:$0xff] }
   0x3   :  { %v300_v5 = vpack.c.bf16 %v30_v4, %v29_v2  ;;  %v19_v7 = vld [vmem:[%s504_s0 + $0x40] sm:$0xff]  ;;  %272 = vmatprep.mubr.f32.mxu0 %v11_v6  ;;  %v33_v11 = vld [vmem:[%s503_s1 + $0x30] sm:$0xff]  ;;  %v34_v12 = vld [vmem:[%s503_s1 + $0x38] sm:$0xff] }
   0x4   :  { %297 = vmatprep.subr.bf16.mxu0 %v296_v3  ;;  %328 = vmatprep.subr.bf16.mxu1 %v296_v3  ;;  %v31_v8 = vld [vmem:[%s503_s1 + $0x20] sm:$0xff]  ;;  %v308_v13 = vpack.c.bf16 %v34_v12, %v33_v11  ;;  %v36_v15 = vld [vmem:[%s503_s1 + $0x48] sm:$0xff]  ;;  %v37_v17 = vld [vmem:[%s503_s1 + $0x50] sm:$0xff] }
   0x5   :  { %299 = vmatpush3.bf16.xpose.msra.mxu0 %v296_v3  ;;  %336 = vmatpush3.bf16.xpose.msra.mxu1 %v296_v3  ;;  %v304_v10 = vpack.c.bf16 %v32_v9, %v31_v8  ;;  %v35_v14 = vld [vmem:[%s503_s1 + $0x40] sm:$0xff]  ;;  %v38_v18 = vld [vmem:[%s503_s1 + $0x58] sm:$0xff]  ;;  %v40_v21 = vld [vmem:[%s503_s1 + $0x68] sm:$0xff] }
   0x6   :  { %301 = vmatprep.subr.bf16.mxu0 %v300_v5  ;;  %329 = vmatprep.subr.bf16.mxu1 %v300_v5  ;;  %v312_v16 = vpack.c.bf16 %v36_v15, %v35_v14  ;;  %v316_v19 = vpack.c.bf16 %v38_v18, %v37_v17  ;;  %v39_v20 = vld [vmem:[%s503_s1 + $0x60] sm:$0xff]  ;;  %v41_v23 = vld [vmem:[%s503_s1 + $0x70] sm:$0xff]  ;;  %v42_v24 = vld [vmem:[%s503_s1 + $0x78] sm:$0xff] }
   0x7   :  { %284 = vmatprep.mubr.f32.mxu1 %v19_v7  ;;  %v320_v22 = vpack.c.bf16 %v40_v21, %v39_v20  ;;  %v324_v25 = vpack.c.bf16 %v42_v24, %v41_v23  ;;  %v12_v26 = vld [vmem:[%s504_s0 + $0x8] sm:$0xff]  ;;  %v13_v28 = vld [vmem:[%s504_s0 + $0x10] sm:$0xff]  ;;  %v14_v30 = vld [vmem:[%s504_s0 + $0x18] sm:$0xff] }
   0x8   :  { %v20_v27 = vld [vmem:[%s504_s0 + $0x48] sm:$0xff]  ;;  %v21_v29 = vld [vmem:[%s504_s0 + $0x50] sm:$0xff]  ;;  %v22_v31 = vld [vmem:[%s504_s0 + $0x58] sm:$0xff] }
   0x9   :  { %v15_v32 = vld [vmem:[%s504_s0 + $0x20] sm:$0xff]  ;;  %v16_v34 = vld [vmem:[%s504_s0 + $0x28] sm:$0xff]  ;;  %v17_v36 = vld [vmem:[%s504_s0 + $0x30] sm:$0xff] }
   0xa   :  { %v23_v33 = vld [vmem:[%s504_s0 + $0x60] sm:$0xff]  ;;  %v24_v35 = vld [vmem:[%s504_s0 + $0x68] sm:$0xff]  ;;  %v25_v37 = vld [vmem:[%s504_s0 + $0x70] sm:$0xff] }
   0xb   :  { %v18_v38 = vld [vmem:[%s504_s0 + $0x38] sm:$0xff] }
   0xc   :  { %v26_v39 = vld [vmem:[%s504_s0 + $0x78] sm:$0xff] }
   0xd   :  { %303 = vmatpush3.bf16.xpose.msra.mxu0 %v300_v5  ;;  %337 = vmatpush3.bf16.xpose.msra.mxu1 %v300_v5 }
   0xe   :  { %305 = vmatprep.subr.bf16.mxu0 %v304_v10  ;;  %330 = vmatprep.subr.bf16.mxu1 %v304_v10 }
  0x15   :  { %307 = vmatpush3.bf16.xpose.msra.mxu0 %v304_v10  ;;  %338 = vmatpush3.bf16.xpose.msra.mxu1 %v304_v10 }
  0x16   :  { %309 = vmatprep.subr.bf16.mxu0 %v308_v13  ;;  %331 = vmatprep.subr.bf16.mxu1 %v308_v13 }
  0x1d   :  { %311 = vmatpush3.bf16.xpose.msra.mxu0 %v308_v13  ;;  %339 = vmatpush3.bf16.xpose.msra.mxu1 %v308_v13 }
  0x1e   :  { %313 = vmatprep.subr.bf16.mxu0 %v312_v16  ;;  %332 = vmatprep.subr.bf16.mxu1 %v312_v16 }
  0x25   :  { %315 = vmatpush3.bf16.xpose.msra.mxu0 %v312_v16  ;;  %340 = vmatpush3.bf16.xpose.msra.mxu1 %v312_v16 }
  0x26   :  { %317 = vmatprep.subr.bf16.mxu0 %v316_v19  ;;  %333 = vmatprep.subr.bf16.mxu1 %v316_v19 }
  0x2d   :  { %319 = vmatpush3.bf16.xpose.msra.mxu0 %v316_v19  ;;  %341 = vmatpush3.bf16.xpose.msra.mxu1 %v316_v19 }
  0x2e   :  { %321 = vmatprep.subr.bf16.mxu0 %v320_v22  ;;  %334 = vmatprep.subr.bf16.mxu1 %v320_v22 }
  0x35   :  { %323 = vmatpush3.bf16.xpose.msra.mxu0 %v320_v22  ;;  %342 = vmatpush3.bf16.xpose.msra.mxu1 %v320_v22 }
  0x36   :  { %325 = vmatprep.subr.bf16.mxu0 %v324_v25  ;;  %335 = vmatprep.subr.bf16.mxu1 %v324_v25 }
  0x3d   :  { %327 = vmatpush3.bf16.xpose.msra.mxu0 %v324_v25  ;;  %343 = vmatpush3.bf16.xpose.msra.mxu1 %v324_v25 }
  0x44   :  { %273 = vmatmul.mubr.f32.vlgmr.msra.gmra.mrb[0].mxu0 %v12_v26  ;;  %285 = vmatmul.mubr.f32.vlgmr.msra.gmra.mrb[0].mxu1 %v20_v27 }
  0x45   :  { %275 = vmatprep.mubr.f32.mxu0 %v13_v28  ;;  %287 = vmatprep.mubr.f32.mxu1 %v21_v29 }
  0x48   :  { %276 = vmatmul.mubr.f32.gmra.mrb[2].mxu0 %v14_v30  ;;  %288 = vmatmul.mubr.f32.gmra.mrb[2].mxu1 %v22_v31 }
  0x49   :  { %278 = vmatprep.mubr.f32.mxu0 %v15_v32  ;;  %290 = vmatprep.mubr.f32.mxu1 %v23_v33 }
  0x4c   :  { %279 = vmatmul.mubr.f32.gmra.mrb[4].mxu0 %v16_v34  ;;  %291 = vmatmul.mubr.f32.gmra.mrb[4].mxu1 %v24_v35 }
  0x4d   :  { %281 = vmatprep.mubr.f32.mxu0 %v17_v36  ;;  %293 = vmatprep.mubr.f32.mxu1 %v25_v37 }
  0x50   :  { %282 = vmatmul.mubr.f32.gmra.mrb[6].mxu0 %v18_v38  ;;  %294 = vmatmul.mubr.f32.gmra.mrb[6].mxu1 %v26_v39 }
 0x117   :  { %v274_v40 = vpop.f32.mrb[0].mxu0  ;;  %v286_v41 = vpop.f32.mrb[0].mxu1 }
 0x118   :  { %189 = vst [vmem:[%s505_s2 + $0x8] sm:$0xff] %v274_v40  ;;  %197 = vst [vmem:[%s505_s2 + $0x48] sm:$0xff] %v286_v41  ;;  %v109_v42 = vpop.f32.mrb[1].mxu0  ;;  %v149_v43 = vpop.f32.mrb[1].mxu1 }
 0x119   :  { %188 = vst [vmem:[%s505_s2] sm:$0xff] %v109_v42  ;;  %196 = vst [vmem:[%s505_s2 + $0x40] sm:$0xff] %v149_v43 }
 0x11b   :  { %v277_v44 = vpop.f32.mrb[2].mxu0  ;;  %v289_v45 = vpop.f32.mrb[2].mxu1 }
 0x11c   :  { %191 = vst [vmem:[%s505_s2 + $0x18] sm:$0xff] %v277_v44  ;;  %199 = vst [vmem:[%s505_s2 + $0x58] sm:$0xff] %v289_v45  ;;  %v119_v46 = vpop.f32.mrb[3].mxu0  ;;  %v159_v47 = vpop.f32.mrb[3].mxu1 }
 0x11d   :  { %190 = vst [vmem:[%s505_s2 + $0x10] sm:$0xff] %v119_v46  ;;  %198 = vst [vmem:[%s505_s2 + $0x50] sm:$0xff] %v159_v47 }
 0x11f   :  { %v280_v48 = vpop.f32.mrb[4].mxu0  ;;  %v292_v49 = vpop.f32.mrb[4].mxu1 }
 0x120   :  { %193 = vst [vmem:[%s505_s2 + $0x28] sm:$0xff] %v280_v48  ;;  %201 = vst [vmem:[%s505_s2 + $0x68] sm:$0xff] %v292_v49  ;;  %v129_v50 = vpop.f32.mrb[5].mxu0  ;;  %v169_v51 = vpop.f32.mrb[5].mxu1 }
 0x121   :  { %192 = vst [vmem:[%s505_s2 + $0x20] sm:$0xff] %v129_v50  ;;  %200 = vst [vmem:[%s505_s2 + $0x60] sm:$0xff] %v169_v51 }
 0x123   :  { %v283_v52 = vpop.f32.mrb[6].mxu0  ;;  %v295_v53 = vpop.f32.mrb[6].mxu1 }
 0x124   :  { %195 = vst [vmem:[%s505_s2 + $0x38] sm:$0xff] %v283_v52  ;;  %203 = vst [vmem:[%s505_s2 + $0x78] sm:$0xff] %v295_v53  ;;  %v139_v54 = vpop.f32.mrb[7].mxu0  ;;  %v179_v55 = vpop.f32.mrb[7].mxu1 }
 0x125   :  { %194 = vst [vmem:[%s505_s2 + $0x30] sm:$0xff] %v139_v54  ;;  %202 = vst [vmem:[%s505_s2 + $0x70] sm:$0xff] %v179_v55 }

</bundles_post_ra>
